<compile_context>
chip_gen: v6e
topology: v6e:2x2x1
jax: 0.10.0
libtpu: 0.0.40
codegen_flags: <defaults>
</compile_context>

<pallas_src>
import jax
import jax.numpy as jnp
import numpy as np
from jax.experimental import pallas as pl
from jax.experimental.pallas import tpu as pltpu

# Small, module-consistent sizes.
BATCH = 2
SEQ = 8          # sequence_length
INPUT = 28       # input_size
HIDDEN = 32      # hidden_size
NUM_CLASS = 10
NUM_LAYERS = 2   # layers are unrolled explicitly in the kernel
C_PAD = 128      # lane-dense padded FC output width


def lstm_fc_kernel(x_ref,                        # (T*B, Dp)
                   wih0_ref, whh0_ref, b0_ref,   # (Dp,4H), (H,4H), (1,4H)
                   wih1_ref, whh1_ref, b1_ref,   # (H,4H),  (H,4H), (1,4H)
                   wfc_ref, bfc_ref,             # (T, H, Cp), (1, Cp)
                   out_ref,                      # (B, Cp)
                   seq0_ref):                    # (T*B, H) scratch (layer-0 outs)
    T = wfc_ref.shape[0]
    H = whh0_ref.shape[0]
    B = out_ref.shape[0]
    Cp = out_ref.shape[1]

    def cell(gates, c):
        # Gate lane order is (i, f, o, g): one sigmoid over lanes [0, 3H),
        # one tanh over lanes [3H, 4H).
        sig = jax.nn.sigmoid(gates[:, :3 * H])
        g_g = jnp.tanh(gates[:, 3 * H:])
        i_g = sig[:, 0 * H:1 * H]
        f_g = sig[:, 1 * H:2 * H]
        o_g = sig[:, 2 * H:3 * H]
        c_new = f_g * c + i_g * g_g
        h_new = o_g * jnp.tanh(c_new)
        return h_new, c_new

    # ---- layer 0: hoisted input projection + unrolled recurrence ------------
    gx0 = jnp.dot(x_ref[...], wih0_ref[...],
                  preferred_element_type=jnp.float32) + b0_ref[...]   # (T*B,4H)
    whh0 = whh0_ref[...]
    h = jnp.zeros((B, H), jnp.float32)
    c = jnp.zeros((B, H), jnp.float32)
    for t in range(T):                                   # fully unrolled (T=8)
        gates = gx0[t * B:(t + 1) * B, :] + jnp.dot(
            h, whh0, preferred_element_type=jnp.float32)
        h, c = cell(gates, c)
        seq0_ref[t * B:(t + 1) * B, :] = h

    # ---- layer 1: hoisted projection of layer-0 outputs, FC head fused ------
    gx1 = jnp.dot(seq0_ref[...], wih1_ref[...],
                  preferred_element_type=jnp.float32) + b1_ref[...]   # (T*B,4H)
    whh1 = whh1_ref[...]
    h = jnp.zeros((B, H), jnp.float32)
    c = jnp.zeros((B, H), jnp.float32)
    acc = jnp.broadcast_to(bfc_ref[...], (B, Cp))        # (B, Cp) f32
    for t in range(T):
        gates = gx1[t * B:(t + 1) * B, :] + jnp.dot(
            h, whh1, preferred_element_type=jnp.float32)
        h, c = cell(gates, c)
        acc = acc + jnp.dot(h, wfc_ref[t],
                            preferred_element_type=jnp.float32)
    out_ref[...] = acc


def rnn_forward(x, params):
    """x: (B, T, D) float32.  Returns logits (B, NUM_CLASS) float32."""
    B, T, D = x.shape
    H = HIDDEN
    C = NUM_CLASS
    Dp = ((D + 7) // 8) * 8      # pad contraction dim 28 -> 32
    Cp = C_PAD                   # lane-dense FC output width

    # Time-major, flattened to (T*B, D), zero-padded along K.
    x_tb = jnp.transpose(x, (1, 0, 2)).reshape(T * B, D)
    x_p = jnp.pad(x_tb, ((0, 0), (0, Dp - D)))

    def reorder(w):
        # PyTorch gate row order (i, f, g, o) -> kernel order (i, f, o, g)
        i, f, g, o = jnp.split(w, 4, axis=0)
        return jnp.concatenate([i, f, o, g], axis=0)

    # Pre-transpose LSTM weights to (in_dim, 4H); combine the two bias vectors.
    wih0 = jnp.pad(reorder(params["w_ih_l0"]).T, ((0, Dp - D), (0, 0)))  # (Dp,4H)
    whh0 = reorder(params["w_hh_l0"]).T                                   # (H,4H)
    b0 = reorder(params["b_ih_l0"] + params["b_hh_l0"]).reshape(1, 4 * H)
    wih1 = reorder(params["w_ih_l1"]).T                                   # (H,4H)
    whh1 = reorder(params["w_hh_l1"]).T                                   # (H,4H)
    b1 = reorder(params["b_ih_l1"] + params["b_hh_l1"]).reshape(1, 4 * H)

    # fc weight (C, T*H) -> (T, H, C) so flatten order matches out.reshape(B,-1);
    # pad the class dim to 128 lanes for dense stores.
    wfc = jnp.transpose(params["w_fc"].reshape(C, T, H), (1, 2, 0))       # (T,H,C)
    wfc = jnp.pad(wfc, ((0, 0), (0, 0), (0, Cp - C)))                     # (T,H,Cp)
    bfc = jnp.pad(params["b_fc"], (0, Cp - C)).reshape(1, Cp)

    vmem = pl.BlockSpec(memory_space=pltpu.MemorySpace.VMEM)
    out_p = pl.pallas_call(
        lstm_fc_kernel,
        out_shape=jax.ShapeDtypeStruct((B, Cp), jnp.float32),
        in_specs=[vmem] * 9,
        out_specs=vmem,
        scratch_shapes=[
            pltpu.VMEM((T * B, H), jnp.float32),   # layer-0 hidden states
        ],
    )(x_p, wih0, whh0, b0, wih1, whh1, b1, wfc, bfc)
    return out_p[:, :C]


def init_params(key):
    """Deterministic init matching PyTorch parameter shapes (uniform +/- 1/sqrt(H))."""
    H, D, T, C = HIDDEN, INPUT, SEQ, NUM_CLASS
    k = 1.0 / np.sqrt(H)
    kf = 1.0 / np.sqrt(H * T)
    keys = jax.random.split(key, 10)
    u = lambda kk, shape, s: jax.random.uniform(kk, shape, jnp.float32, -s, s)
    return {
        "w_ih_l0": u(keys[0], (4 * H, D), k),
        "w_hh_l0": u(keys[1], (4 * H, H), k),
        "b_ih_l0": u(keys[2], (4 * H,), k),
        "b_hh_l0": u(keys[3], (4 * H,), k),
        "w_ih_l1": u(keys[4], (4 * H, H), k),
        "w_hh_l1": u(keys[5], (4 * H, H), k),
        "b_ih_l1": u(keys[6], (4 * H,), k),
        "b_hh_l1": u(keys[7], (4 * H,), k),
        "w_fc": u(keys[8], (C, T * H), kf),
        "b_fc": u(keys[9], (C,), kf),
    }


def rnn_reference(x, params):
    """Pure-JAX reference replicating PyTorch LSTM + Linear semantics."""
    B, T, D = x.shape
    H = HIDDEN

    def run_layer(seq, wih, whh, bih, bhh):
        h = jnp.zeros((B, H), jnp.float32)
        c = jnp.zeros((B, H), jnp.float32)
        outs = []
        for t in range(T):
            gates = seq[:, t, :] @ wih.T + bih + h @ whh.T + bhh
            i = jax.nn.sigmoid(gates[:, 0 * H:1 * H])
            f = jax.nn.sigmoid(gates[:, 1 * H:2 * H])
            g = jnp.tanh(gates[:, 2 * H:3 * H])
            o = jax.nn.sigmoid(gates[:, 3 * H:4 * H])
            c = f * c + i * g
            h = o * jnp.tanh(c)
            outs.append(h)
        return jnp.stack(outs, axis=1)  # (B, T, H)

    s0 = run_layer(x, params["w_ih_l0"], params["w_hh_l0"],
                   params["b_ih_l0"], params["b_hh_l0"])
    s1 = run_layer(s0, params["w_ih_l1"], params["w_hh_l1"],
                   params["b_ih_l1"], params["b_hh_l1"])
    flat = s1.reshape(B, -1)
    return flat @ params["w_fc"].T + params["b_fc"]


if __name__ == "__main__":
    key = jax.random.PRNGKey(0)
    kx, kp = jax.random.split(key)
    x = jax.random.normal(kx, (BATCH, SEQ, INPUT), jnp.float32)
    params = init_params(kp)

    out = jax.block_until_ready(rnn_forward(x, params))
    ref = jax.block_until_ready(rnn_reference(x, params))

    assert out.shape == (BATCH, NUM_CLASS), out.shape
    assert np.all(np.isfinite(np.asarray(out)))
    np.testing.assert_allclose(np.asarray(out), np.asarray(ref),
                               rtol=2e-2, atol=2e-2)
    print("KERNEL_OK")
</pallas_src>

<mosaic_0001>
module attributes {stable_mosaic.version = 11 : i64} {
  func.func @lstm_fc_kernel(%arg0: memref<16x32xf32, #tpu.memory_space<vmem>>, %arg1: memref<32x128xf32, #tpu.memory_space<vmem>>, %arg2: memref<32x128xf32, #tpu.memory_space<vmem>>, %arg3: memref<1x128xf32, #tpu.memory_space<vmem>>, %arg4: memref<32x128xf32, #tpu.memory_space<vmem>>, %arg5: memref<32x128xf32, #tpu.memory_space<vmem>>, %arg6: memref<1x128xf32, #tpu.memory_space<vmem>>, %arg7: memref<8x32x128xf32, #tpu.memory_space<vmem>>, %arg8: memref<1x128xf32, #tpu.memory_space<vmem>>, %arg9: memref<2x128xf32, #tpu.memory_space<vmem>>, %arg10: memref<16x32xf32, #tpu.memory_space<vmem>>) attributes {dimension_semantics = [], scalar_prefetch = 0 : i64, scratch_operands = 1 : i64, tpu.core_type = #tpu.core_type<tc>} {
    %c0 = arith.constant 0 : index
    %c0_0 = arith.constant 0 : index
    %0 = vector.load %arg0[%c0, %c0_0] : memref<16x32xf32, #tpu.memory_space<vmem>>, vector<16x32xf32>
    %c0_1 = arith.constant 0 : index
    %c0_2 = arith.constant 0 : index
    %1 = vector.load %arg1[%c0_1, %c0_2] : memref<32x128xf32, #tpu.memory_space<vmem>>, vector<32x128xf32>
    %cst = arith.constant dense<0.000000e+00> : vector<16x128xf32>
    %2 = tpu.matmul %0, %1, %cst {dimension_numbers = #tpu.dot_dimension_numbers<[1], [0], [0], [1], [0, 0, 1, 1], [], []>} : vector<16x32xf32>, vector<32x128xf32>, vector<16x128xf32> -> vector<16x128xf32>
    %c0_3 = arith.constant 0 : index
    %c0_4 = arith.constant 0 : index
    %3 = vector.load %arg3[%c0_3, %c0_4] : memref<1x128xf32, #tpu.memory_space<vmem>>, vector<1x128xf32>
    %4 = vector.broadcast %3 : vector<1x128xf32> to vector<16x128xf32>
    %5 = arith.addf %2, %4 : vector<16x128xf32>
    %c0_5 = arith.constant 0 : index
    %c0_6 = arith.constant 0 : index
    %6 = vector.load %arg2[%c0_5, %c0_6] : memref<32x128xf32, #tpu.memory_space<vmem>>, vector<32x128xf32>
    %cst_7 = arith.constant 0.000000e+00 : f32
    %7 = vector.broadcast %cst_7 : f32 to vector<2x32xf32>
    %cst_8 = arith.constant 0.000000e+00 : f32
    %8 = vector.broadcast %cst_8 : f32 to vector<2x32xf32>
    %9 = vector.extract_strided_slice %5 {offsets = [0, 0], sizes = [2, 128], strides = [1, 1]} : vector<16x128xf32> to vector<2x128xf32>
    %cst_9 = arith.constant dense<0.000000e+00> : vector<2x128xf32>
    %10 = tpu.matmul %7, %6, %cst_9 {dimension_numbers = #tpu.dot_dimension_numbers<[1], [0], [0], [1], [0, 0, 1, 1], [], []>} : vector<2x32xf32>, vector<32x128xf32>, vector<2x128xf32> -> vector<2x128xf32>
    %11 = arith.addf %9, %10 : vector<2x128xf32>
    %12 = vector.extract_strided_slice %11 {offsets = [0, 0], sizes = [2, 96], strides = [1, 1]} : vector<2x128xf32> to vector<2x96xf32>
    %13 = arith.negf %12 : vector<2x96xf32>
    %14 = math.exp %13 : vector<2x96xf32>
    %cst_10 = arith.constant 1.000000e+00 : f32
    %15 = vector.broadcast %cst_10 : f32 to vector<2x96xf32>
    %16 = arith.addf %15, %14 : vector<2x96xf32>
    %17 = arith.divf %15, %16 : vector<2x96xf32>
    %18 = vector.extract_strided_slice %11 {offsets = [0, 96], sizes = [2, 32], strides = [1, 1]} : vector<2x128xf32> to vector<2x32xf32>
    %19 = math.tanh %18 : vector<2x32xf32>
    %20 = vector.extract_strided_slice %17 {offsets = [0, 0], sizes = [2, 32], strides = [1, 1]} : vector<2x96xf32> to vector<2x32xf32>
    %21 = vector.extract_strided_slice %17 {offsets = [0, 32], sizes = [2, 32], strides = [1, 1]} : vector<2x96xf32> to vector<2x32xf32>
    %22 = vector.extract_strided_slice %17 {offsets = [0, 64], sizes = [2, 32], strides = [1, 1]} : vector<2x96xf32> to vector<2x32xf32>
    %23 = arith.mulf %21, %8 : vector<2x32xf32>
    %24 = arith.mulf %20, %19 : vector<2x32xf32>
    %25 = arith.addf %23, %24 : vector<2x32xf32>
    %26 = math.tanh %25 : vector<2x32xf32>
    %27 = arith.mulf %22, %26 : vector<2x32xf32>
    %c0_11 = arith.constant 0 : index
    %c0_12 = arith.constant 0 : index
    %28 = vector.load %arg10[%c0_11, %c0_12] : memref<16x32xf32, #tpu.memory_space<vmem>>, vector<2x32xf32>
    tpu.vector_store %arg10[%c0_11, %c0_12], %27 {strides = array<i32>} : memref<16x32xf32, #tpu.memory_space<vmem>>, vector<2x32xf32>,
    %29 = vector.extract_strided_slice %5 {offsets = [2, 0], sizes = [2, 128], strides = [1, 1]} : vector<16x128xf32> to vector<2x128xf32>
    %cst_13 = arith.constant dense<0.000000e+00> : vector<2x128xf32>
    %30 = tpu.matmul %27, %6, %cst_13 {dimension_numbers = #tpu.dot_dimension_numbers<[1], [0], [0], [1], [0, 0, 1, 1], [], []>} : vector<2x32xf32>, vector<32x128xf32>, vector<2x128xf32> -> vector<2x128xf32>
    %31 = arith.addf %29, %30 : vector<2x128xf32>
    %32 = vector.extract_strided_slice %31 {offsets = [0, 0], sizes = [2, 96], strides = [1, 1]} : vector<2x128xf32> to vector<2x96xf32>
    %33 = arith.negf %32 : vector<2x96xf32>
    %34 = math.exp %33 : vector<2x96xf32>
    %cst_14 = arith.constant 1.000000e+00 : f32
    %35 = vector.broadcast %cst_14 : f32 to vector<2x96xf32>
    %36 = arith.addf %35, %34 : vector<2x96xf32>
    %37 = arith.divf %35, %36 : vector<2x96xf32>
    %38 = vector.extract_strided_slice %31 {offsets = [0, 96], sizes = [2, 32], strides = [1, 1]} : vector<2x128xf32> to vector<2x32xf32>
    %39 = math.tanh %38 : vector<2x32xf32>
    %40 = vector.extract_strided_slice %37 {offsets = [0, 0], sizes = [2, 32], strides = [1, 1]} : vector<2x96xf32> to vector<2x32xf32>
    %41 = vector.extract_strided_slice %37 {offsets = [0, 32], sizes = [2, 32], strides = [1, 1]} : vector<2x96xf32> to vector<2x32xf32>
    %42 = vector.extract_strided_slice %37 {offsets = [0, 64], sizes = [2, 32], strides = [1, 1]} : vector<2x96xf32> to vector<2x32xf32>
    %43 = arith.mulf %41, %25 : vector<2x32xf32>
    %44 = arith.mulf %40, %39 : vector<2x32xf32>
    %45 = arith.addf %43, %44 : vector<2x32xf32>
    %46 = math.tanh %45 : vector<2x32xf32>
    %47 = arith.mulf %42, %46 : vector<2x32xf32>
    %c2 = arith.constant 2 : index
    %c0_15 = arith.constant 0 : index
    %48 = vector.load %arg10[%c2, %c0_15] : memref<16x32xf32, #tpu.memory_space<vmem>>, vector<2x32xf32>
    tpu.vector_store %arg10[%c2, %c0_15], %47 {strides = array<i32>} : memref<16x32xf32, #tpu.memory_space<vmem>>, vector<2x32xf32>,
    %49 = vector.extract_strided_slice %5 {offsets = [4, 0], sizes = [2, 128], strides = [1, 1]} : vector<16x128xf32> to vector<2x128xf32>
    %cst_16 = arith.constant dense<0.000000e+00> : vector<2x128xf32>
    %50 = tpu.matmul %47, %6, %cst_16 {dimension_numbers = #tpu.dot_dimension_numbers<[1], [0], [0], [1], [0, 0, 1, 1], [], []>} : vector<2x32xf32>, vector<32x128xf32>, vector<2x128xf32> -> vector<2x128xf32>
    %51 = arith.addf %49, %50 : vector<2x128xf32>
    %52 = vector.extract_strided_slice %51 {offsets = [0, 0], sizes = [2, 96], strides = [1, 1]} : vector<2x128xf32> to vector<2x96xf32>
    %53 = arith.negf %52 : vector<2x96xf32>
    %54 = math.exp %53 : vector<2x96xf32>
    %cst_17 = arith.constant 1.000000e+00 : f32
    %55 = vector.broadcast %cst_17 : f32 to vector<2x96xf32>
    %56 = arith.addf %55, %54 : vector<2x96xf32>
    %57 = arith.divf %55, %56 : vector<2x96xf32>
    %58 = vector.extract_strided_slice %51 {offsets = [0, 96], sizes = [2, 32], strides = [1, 1]} : vector<2x128xf32> to vector<2x32xf32>
    %59 = math.tanh %58 : vector<2x32xf32>
    %60 = vector.extract_strided_slice %57 {offsets = [0, 0], sizes = [2, 32], strides = [1, 1]} : vector<2x96xf32> to vector<2x32xf32>
    %61 = vector.extract_strided_slice %57 {offsets = [0, 32], sizes = [2, 32], strides = [1, 1]} : vector<2x96xf32> to vector<2x32xf32>
    %62 = vector.extract_strided_slice %57 {offsets = [0, 64], sizes = [2, 32], strides = [1, 1]} : vector<2x96xf32> to vector<2x32xf32>
    %63 = arith.mulf %61, %45 : vector<2x32xf32>
    %64 = arith.mulf %60, %59 : vector<2x32xf32>
    %65 = arith.addf %63, %64 : vector<2x32xf32>
    %66 = math.tanh %65 : vector<2x32xf32>
    %67 = arith.mulf %62, %66 : vector<2x32xf32>
    %c4 = arith.constant 4 : index
    %c0_18 = arith.constant 0 : index
    %68 = vector.load %arg10[%c4, %c0_18] : memref<16x32xf32, #tpu.memory_space<vmem>>, vector<2x32xf32>
    tpu.vector_store %arg10[%c4, %c0_18], %67 {strides = array<i32>} : memref<16x32xf32, #tpu.memory_space<vmem>>, vector<2x32xf32>,
    %69 = vector.extract_strided_slice %5 {offsets = [6, 0], sizes = [2, 128], strides = [1, 1]} : vector<16x128xf32> to vector<2x128xf32>
    %cst_19 = arith.constant dense<0.000000e+00> : vector<2x128xf32>
    %70 = tpu.matmul %67, %6, %cst_19 {dimension_numbers = #tpu.dot_dimension_numbers<[1], [0], [0], [1], [0, 0, 1, 1], [], []>} : vector<2x32xf32>, vector<32x128xf32>, vector<2x128xf32> -> vector<2x128xf32>
    %71 = arith.addf %69, %70 : vector<2x128xf32>
    %72 = vector.extract_strided_slice %71 {offsets = [0, 0], sizes = [2, 96], strides = [1, 1]} : vector<2x128xf32> to vector<2x96xf32>
    %73 = arith.negf %72 : vector<2x96xf32>
    %74 = math.exp %73 : vector<2x96xf32>
    %cst_20 = arith.constant 1.000000e+00 : f32
    %75 = vector.broadcast %cst_20 : f32 to vector<2x96xf32>
    %76 = arith.addf %75, %74 : vector<2x96xf32>
    %77 = arith.divf %75, %76 : vector<2x96xf32>
    %78 = vector.extract_strided_slice %71 {offsets = [0, 96], sizes = [2, 32], strides = [1, 1]} : vector<2x128xf32> to vector<2x32xf32>
    %79 = math.tanh %78 : vector<2x32xf32>
    %80 = vector.extract_strided_slice %77 {offsets = [0, 0], sizes = [2, 32], strides = [1, 1]} : vector<2x96xf32> to vector<2x32xf32>
    %81 = vector.extract_strided_slice %77 {offsets = [0, 32], sizes = [2, 32], strides = [1, 1]} : vector<2x96xf32> to vector<2x32xf32>
    %82 = vector.extract_strided_slice %77 {offsets = [0, 64], sizes = [2, 32], strides = [1, 1]} : vector<2x96xf32> to vector<2x32xf32>
    %83 = arith.mulf %81, %65 : vector<2x32xf32>
    %84 = arith.mulf %80, %79 : vector<2x32xf32>
    %85 = arith.addf %83, %84 : vector<2x32xf32>
    %86 = math.tanh %85 : vector<2x32xf32>
    %87 = arith.mulf %82, %86 : vector<2x32xf32>
    %c6 = arith.constant 6 : index
    %c0_21 = arith.constant 0 : index
    %88 = vector.load %arg10[%c6, %c0_21] : memref<16x32xf32, #tpu.memory_space<vmem>>, vector<2x32xf32>
    tpu.vector_store %arg10[%c6, %c0_21], %87 {strides = array<i32>} : memref<16x32xf32, #tpu.memory_space<vmem>>, vector<2x32xf32>,
    %89 = vector.extract_strided_slice %5 {offsets = [8, 0], sizes = [2, 128], strides = [1, 1]} : vector<16x128xf32> to vector<2x128xf32>
    %cst_22 = arith.constant dense<0.000000e+00> : vector<2x128xf32>
    %90 = tpu.matmul %87, %6, %cst_22 {dimension_numbers = #tpu.dot_dimension_numbers<[1], [0], [0], [1], [0, 0, 1, 1], [], []>} : vector<2x32xf32>, vector<32x128xf32>, vector<2x128xf32> -> vector<2x128xf32>
    %91 = arith.addf %89, %90 : vector<2x128xf32>
    %92 = vector.extract_strided_slice %91 {offsets = [0, 0], sizes = [2, 96], strides = [1, 1]} : vector<2x128xf32> to vector<2x96xf32>
    %93 = arith.negf %92 : vector<2x96xf32>
    %94 = math.exp %93 : vector<2x96xf32>
    %cst_23 = arith.constant 1.000000e+00 : f32
    %95 = vector.broadcast %cst_23 : f32 to vector<2x96xf32>
    %96 = arith.addf %95, %94 : vector<2x96xf32>
    %97 = arith.divf %95, %96 : vector<2x96xf32>
    %98 = vector.extract_strided_slice %91 {offsets = [0, 96], sizes = [2, 32], strides = [1, 1]} : vector<2x128xf32> to vector<2x32xf32>
    %99 = math.tanh %98 : vector<2x32xf32>
    %100 = vector.extract_strided_slice %97 {offsets = [0, 0], sizes = [2, 32], strides = [1, 1]} : vector<2x96xf32> to vector<2x32xf32>
    %101 = vector.extract_strided_slice %97 {offsets = [0, 32], sizes = [2, 32], strides = [1, 1]} : vector<2x96xf32> to vector<2x32xf32>
    %102 = vector.extract_strided_slice %97 {offsets = [0, 64], sizes = [2, 32], strides = [1, 1]} : vector<2x96xf32> to vector<2x32xf32>
    %103 = arith.mulf %101, %85 : vector<2x32xf32>
    %104 = arith.mulf %100, %99 : vector<2x32xf32>
    %105 = arith.addf %103, %104 : vector<2x32xf32>
    %106 = math.tanh %105 : vector<2x32xf32>
    %107 = arith.mulf %102, %106 : vector<2x32xf32>
    %c8 = arith.constant 8 : index
    %c0_24 = arith.constant 0 : index
    %108 = vector.load %arg10[%c8, %c0_24] : memref<16x32xf32, #tpu.memory_space<vmem>>, vector<2x32xf32>
    tpu.vector_store %arg10[%c8, %c0_24], %107 {strides = array<i32>} : memref<16x32xf32, #tpu.memory_space<vmem>>, vector<2x32xf32>,
    %109 = vector.extract_strided_slice %5 {offsets = [10, 0], sizes = [2, 128], strides = [1, 1]} : vector<16x128xf32> to vector<2x128xf32>
    %cst_25 = arith.constant dense<0.000000e+00> : vector<2x128xf32>
    %110 = tpu.matmul %107, %6, %cst_25 {dimension_numbers = #tpu.dot_dimension_numbers<[1], [0], [0], [1], [0, 0, 1, 1], [], []>} : vector<2x32xf32>, vector<32x128xf32>, vector<2x128xf32> -> vector<2x128xf32>
    %111 = arith.addf %109, %110 : vector<2x128xf32>
    %112 = vector.extract_strided_slice %111 {offsets = [0, 0], sizes = [2, 96], strides = [1, 1]} : vector<2x128xf32> to vector<2x96xf32>
    %113 = arith.negf %112 : vector<2x96xf32>
    %114 = math.exp %113 : vector<2x96xf32>
    %cst_26 = arith.constant 1.000000e+00 : f32
    %115 = vector.broadcast %cst_26 : f32 to vector<2x96xf32>
    %116 = arith.addf %115, %114 : vector<2x96xf32>
    %117 = arith.divf %115, %116 : vector<2x96xf32>
    %118 = vector.extract_strided_slice %111 {offsets = [0, 96], sizes = [2, 32], strides = [1, 1]} : vector<2x128xf32> to vector<2x32xf32>
    %119 = math.tanh %118 : vector<2x32xf32>
    %120 = vector.extract_strided_slice %117 {offsets = [0, 0], sizes = [2, 32], strides = [1, 1]} : vector<2x96xf32> to vector<2x32xf32>
    %121 = vector.extract_strided_slice %117 {offsets = [0, 32], sizes = [2, 32], strides = [1, 1]} : vector<2x96xf32> to vector<2x32xf32>
    %122 = vector.extract_strided_slice %117 {offsets = [0, 64], sizes = [2, 32], strides = [1, 1]} : vector<2x96xf32> to vector<2x32xf32>
    %123 = arith.mulf %121, %105 : vector<2x32xf32>
    %124 = arith.mulf %120, %119 : vector<2x32xf32>
    %125 = arith.addf %123, %124 : vector<2x32xf32>
    %126 = math.tanh %125 : vector<2x32xf32>
    %127 = arith.mulf %122, %126 : vector<2x32xf32>
    %c10 = arith.constant 10 : index
    %c0_27 = arith.constant 0 : index
    %128 = vector.load %arg10[%c10, %c0_27] : memref<16x32xf32, #tpu.memory_space<vmem>>, vector<2x32xf32>
    tpu.vector_store %arg10[%c10, %c0_27], %127 {strides = array<i32>} : memref<16x32xf32, #tpu.memory_space<vmem>>, vector<2x32xf32>,
    %129 = vector.extract_strided_slice %5 {offsets = [12, 0], sizes = [2, 128], strides = [1, 1]} : vector<16x128xf32> to vector<2x128xf32>
    %cst_28 = arith.constant dense<0.000000e+00> : vector<2x128xf32>
    %130 = tpu.matmul %127, %6, %cst_28 {dimension_numbers = #tpu.dot_dimension_numbers<[1], [0], [0], [1], [0, 0, 1, 1], [], []>} : vector<2x32xf32>, vector<32x128xf32>, vector<2x128xf32> -> vector<2x128xf32>
    %131 = arith.addf %129, %130 : vector<2x128xf32>
    %132 = vector.extract_strided_slice %131 {offsets = [0, 0], sizes = [2, 96], strides = [1, 1]} : vector<2x128xf32> to vector<2x96xf32>
    %133 = arith.negf %132 : vector<2x96xf32>
    %134 = math.exp %133 : vector<2x96xf32>
    %cst_29 = arith.constant 1.000000e+00 : f32
    %135 = vector.broadcast %cst_29 : f32 to vector<2x96xf32>
    %136 = arith.addf %135, %134 : vector<2x96xf32>
    %137 = arith.divf %135, %136 : vector<2x96xf32>
    %138 = vector.extract_strided_slice %131 {offsets = [0, 96], sizes = [2, 32], strides = [1, 1]} : vector<2x128xf32> to vector<2x32xf32>
    %139 = math.tanh %138 : vector<2x32xf32>
    %140 = vector.extract_strided_slice %137 {offsets = [0, 0], sizes = [2, 32], strides = [1, 1]} : vector<2x96xf32> to vector<2x32xf32>
    %141 = vector.extract_strided_slice %137 {offsets = [0, 32], sizes = [2, 32], strides = [1, 1]} : vector<2x96xf32> to vector<2x32xf32>
    %142 = vector.extract_strided_slice %137 {offsets = [0, 64], sizes = [2, 32], strides = [1, 1]} : vector<2x96xf32> to vector<2x32xf32>
    %143 = arith.mulf %141, %125 : vector<2x32xf32>
    %144 = arith.mulf %140, %139 : vector<2x32xf32>
    %145 = arith.addf %143, %144 : vector<2x32xf32>
    %146 = math.tanh %145 : vector<2x32xf32>
    %147 = arith.mulf %142, %146 : vector<2x32xf32>
    %c12 = arith.constant 12 : index
    %c0_30 = arith.constant 0 : index
    %148 = vector.load %arg10[%c12, %c0_30] : memref<16x32xf32, #tpu.memory_space<vmem>>, vector<2x32xf32>
    tpu.vector_store %arg10[%c12, %c0_30], %147 {strides = array<i32>} : memref<16x32xf32, #tpu.memory_space<vmem>>, vector<2x32xf32>,
    %149 = vector.extract_strided_slice %5 {offsets = [14, 0], sizes = [2, 128], strides = [1, 1]} : vector<16x128xf32> to vector<2x128xf32>
    %cst_31 = arith.constant dense<0.000000e+00> : vector<2x128xf32>
    %150 = tpu.matmul %147, %6, %cst_31 {dimension_numbers = #tpu.dot_dimension_numbers<[1], [0], [0], [1], [0, 0, 1, 1], [], []>} : vector<2x32xf32>, vector<32x128xf32>, vector<2x128xf32> -> vector<2x128xf32>
    %151 = arith.addf %149, %150 : vector<2x128xf32>
    %152 = vector.extract_strided_slice %151 {offsets = [0, 0], sizes = [2, 96], strides = [1, 1]} : vector<2x128xf32> to vector<2x96xf32>
    %153 = arith.negf %152 : vector<2x96xf32>
    %154 = math.exp %153 : vector<2x96xf32>
    %cst_32 = arith.constant 1.000000e+00 : f32
    %155 = vector.broadcast %cst_32 : f32 to vector<2x96xf32>
    %156 = arith.addf %155, %154 : vector<2x96xf32>
    %157 = arith.divf %155, %156 : vector<2x96xf32>
    %158 = vector.extract_strided_slice %151 {offsets = [0, 96], sizes = [2, 32], strides = [1, 1]} : vector<2x128xf32> to vector<2x32xf32>
    %159 = math.tanh %158 : vector<2x32xf32>
    %160 = vector.extract_strided_slice %157 {offsets = [0, 0], sizes = [2, 32], strides = [1, 1]} : vector<2x96xf32> to vector<2x32xf32>
    %161 = vector.extract_strided_slice %157 {offsets = [0, 32], sizes = [2, 32], strides = [1, 1]} : vector<2x96xf32> to vector<2x32xf32>
    %162 = vector.extract_strided_slice %157 {offsets = [0, 64], sizes = [2, 32], strides = [1, 1]} : vector<2x96xf32> to vector<2x32xf32>
    %163 = arith.mulf %161, %145 : vector<2x32xf32>
    %164 = arith.mulf %160, %159 : vector<2x32xf32>
    %165 = arith.addf %163, %164 : vector<2x32xf32>
    %166 = math.tanh %165 : vector<2x32xf32>
    %167 = arith.mulf %162, %166 : vector<2x32xf32>
    %c14 = arith.constant 14 : index
    %c0_33 = arith.constant 0 : index
    %168 = vector.load %arg10[%c14, %c0_33] : memref<16x32xf32, #tpu.memory_space<vmem>>, vector<2x32xf32>
    tpu.vector_store %arg10[%c14, %c0_33], %167 {strides = array<i32>} : memref<16x32xf32, #tpu.memory_space<vmem>>, vector<2x32xf32>,
    %c0_34 = arith.constant 0 : index
    %c0_35 = arith.constant 0 : index
    %169 = vector.load %arg10[%c0_34, %c0_35] : memref<16x32xf32, #tpu.memory_space<vmem>>, vector<16x32xf32>
    %c0_36 = arith.constant 0 : index
    %c0_37 = arith.constant 0 : index
    %170 = vector.load %arg4[%c0_36, %c0_37] : memref<32x128xf32, #tpu.memory_space<vmem>>, vector<32x128xf32>
    %cst_38 = arith.constant dense<0.000000e+00> : vector<16x128xf32>
    %171 = tpu.matmul %169, %170, %cst_38 {dimension_numbers = #tpu.dot_dimension_numbers<[1], [0], [0], [1], [0, 0, 1, 1], [], []>} : vector<16x32xf32>, vector<32x128xf32>, vector<16x128xf32> -> vector<16x128xf32>
    %c0_39 = arith.constant 0 : index
    %c0_40 = arith.constant 0 : index
    %172 = vector.load %arg6[%c0_39, %c0_40] : memref<1x128xf32, #tpu.memory_space<vmem>>, vector<1x128xf32>
    %173 = vector.broadcast %172 : vector<1x128xf32> to vector<16x128xf32>
    %174 = arith.addf %171, %173 : vector<16x128xf32>
    %c0_41 = arith.constant 0 : index
    %c0_42 = arith.constant 0 : index
    %175 = vector.load %arg5[%c0_41, %c0_42] : memref<32x128xf32, #tpu.memory_space<vmem>>, vector<32x128xf32>
    %cst_43 = arith.constant 0.000000e+00 : f32
    %176 = vector.broadcast %cst_43 : f32 to vector<2x32xf32>
    %cst_44 = arith.constant 0.000000e+00 : f32
    %177 = vector.broadcast %cst_44 : f32 to vector<2x32xf32>
    %c0_45 = arith.constant 0 : index
    %c0_46 = arith.constant 0 : index
    %178 = vector.load %arg8[%c0_45, %c0_46] : memref<1x128xf32, #tpu.memory_space<vmem>>, vector<1x128xf32>
    %179 = vector.shape_cast %178 : vector<1x128xf32> to vector<1x128xf32>
    %180 = vector.broadcast %179 : vector<1x128xf32> to vector<2x128xf32>
    %181 = vector.extract_strided_slice %174 {offsets = [0, 0], sizes = [2, 128], strides = [1, 1]} : vector<16x128xf32> to vector<2x128xf32>
    %cst_47 = arith.constant dense<0.000000e+00> : vector<2x128xf32>
    %182 = tpu.matmul %176, %175, %cst_47 {dimension_numbers = #tpu.dot_dimension_numbers<[1], [0], [0], [1], [0, 0, 1, 1], [], []>} : vector<2x32xf32>, vector<32x128xf32>, vector<2x128xf32> -> vector<2x128xf32>
    %183 = arith.addf %181, %182 : vector<2x128xf32>
    %184 = vector.extract_strided_slice %183 {offsets = [0, 0], sizes = [2, 96], strides = [1, 1]} : vector<2x128xf32> to vector<2x96xf32>
    %185 = arith.negf %184 : vector<2x96xf32>
    %186 = math.exp %185 : vector<2x96xf32>
    %cst_48 = arith.constant 1.000000e+00 : f32
    %187 = vector.broadcast %cst_48 : f32 to vector<2x96xf32>
    %188 = arith.addf %187, %186 : vector<2x96xf32>
    %189 = arith.divf %187, %188 : vector<2x96xf32>
    %190 = vector.extract_strided_slice %183 {offsets = [0, 96], sizes = [2, 32], strides = [1, 1]} : vector<2x128xf32> to vector<2x32xf32>
    %191 = math.tanh %190 : vector<2x32xf32>
    %192 = vector.extract_strided_slice %189 {offsets = [0, 0], sizes = [2, 32], strides = [1, 1]} : vector<2x96xf32> to vector<2x32xf32>
    %193 = vector.extract_strided_slice %189 {offsets = [0, 32], sizes = [2, 32], strides = [1, 1]} : vector<2x96xf32> to vector<2x32xf32>
    %194 = vector.extract_strided_slice %189 {offsets = [0, 64], sizes = [2, 32], strides = [1, 1]} : vector<2x96xf32> to vector<2x32xf32>
    %195 = arith.mulf %193, %177 : vector<2x32xf32>
    %196 = arith.mulf %192, %191 : vector<2x32xf32>
    %197 = arith.addf %195, %196 : vector<2x32xf32>
    %198 = math.tanh %197 : vector<2x32xf32>
    %199 = arith.mulf %194, %198 : vector<2x32xf32>
    %c0_49 = arith.constant 0 : index
    %c0_50 = arith.constant 0 : index
    %c0_51 = arith.constant 0 : index
    %200 = vector.load %arg7[%c0_49, %c0_50, %c0_51] : memref<8x32x128xf32, #tpu.memory_space<vmem>>, vector<1x32x128xf32>
    %201 = vector.shape_cast %200 : vector<1x32x128xf32> to vector<32x128xf32>
    %cst_52 = arith.constant dense<0.000000e+00> : vector<2x128xf32>
    %202 = tpu.matmul %199, %201, %cst_52 {dimension_numbers = #tpu.dot_dimension_numbers<[1], [0], [0], [1], [0, 0, 1, 1], [], []>} : vector<2x32xf32>, vector<32x128xf32>, vector<2x128xf32> -> vector<2x128xf32>
    %203 = arith.addf %180, %202 : vector<2x128xf32>
    %204 = vector.extract_strided_slice %174 {offsets = [2, 0], sizes = [2, 128], strides = [1, 1]} : vector<16x128xf32> to vector<2x128xf32>
    %cst_53 = arith.constant dense<0.000000e+00> : vector<2x128xf32>
    %205 = tpu.matmul %199, %175, %cst_53 {dimension_numbers = #tpu.dot_dimension_numbers<[1], [0], [0], [1], [0, 0, 1, 1], [], []>} : vector<2x32xf32>, vector<32x128xf32>, vector<2x128xf32> -> vector<2x128xf32>
    %206 = arith.addf %204, %205 : vector<2x128xf32>
    %207 = vector.extract_strided_slice %206 {offsets = [0, 0], sizes = [2, 96], strides = [1, 1]} : vector<2x128xf32> to vector<2x96xf32>
    %208 = arith.negf %207 : vector<2x96xf32>
    %209 = math.exp %208 : vector<2x96xf32>
    %cst_54 = arith.constant 1.000000e+00 : f32
    %210 = vector.broadcast %cst_54 : f32 to vector<2x96xf32>
    %211 = arith.addf %210, %209 : vector<2x96xf32>
    %212 = arith.divf %210, %211 : vector<2x96xf32>
    %213 = vector.extract_strided_slice %206 {offsets = [0, 96], sizes = [2, 32], strides = [1, 1]} : vector<2x128xf32> to vector<2x32xf32>
    %214 = math.tanh %213 : vector<2x32xf32>
    %215 = vector.extract_strided_slice %212 {offsets = [0, 0], sizes = [2, 32], strides = [1, 1]} : vector<2x96xf32> to vector<2x32xf32>
    %216 = vector.extract_strided_slice %212 {offsets = [0, 32], sizes = [2, 32], strides = [1, 1]} : vector<2x96xf32> to vector<2x32xf32>
    %217 = vector.extract_strided_slice %212 {offsets = [0, 64], sizes = [2, 32], strides = [1, 1]} : vector<2x96xf32> to vector<2x32xf32>
    %218 = arith.mulf %216, %197 : vector<2x32xf32>
    %219 = arith.mulf %215, %214 : vector<2x32xf32>
    %220 = arith.addf %218, %219 : vector<2x32xf32>
    %221 = math.tanh %220 : vector<2x32xf32>
    %222 = arith.mulf %217, %221 : vector<2x32xf32>
    %c1 = arith.constant 1 : index
    %c0_55 = arith.constant 0 : index
    %c0_56 = arith.constant 0 : index
    %223 = vector.load %arg7[%c1, %c0_55, %c0_56] : memref<8x32x128xf32, #tpu.memory_space<vmem>>, vector<1x32x128xf32>
    %224 = vector.shape_cast %223 : vector<1x32x128xf32> to vector<32x128xf32>
    %cst_57 = arith.constant dense<0.000000e+00> : vector<2x128xf32>
    %225 = tpu.matmul %222, %224, %cst_57 {dimension_numbers = #tpu.dot_dimension_numbers<[1], [0], [0], [1], [0, 0, 1, 1], [], []>} : vector<2x32xf32>, vector<32x128xf32>, vector<2x128xf32> -> vector<2x128xf32>
    %226 = arith.addf %203, %225 : vector<2x128xf32>
    %227 = vector.extract_strided_slice %174 {offsets = [4, 0], sizes = [2, 128], strides = [1, 1]} : vector<16x128xf32> to vector<2x128xf32>
    %cst_58 = arith.constant dense<0.000000e+00> : vector<2x128xf32>
    %228 = tpu.matmul %222, %175, %cst_58 {dimension_numbers = #tpu.dot_dimension_numbers<[1], [0], [0], [1], [0, 0, 1, 1], [], []>} : vector<2x32xf32>, vector<32x128xf32>, vector<2x128xf32> -> vector<2x128xf32>
    %229 = arith.addf %227, %228 : vector<2x128xf32>
    %230 = vector.extract_strided_slice %229 {offsets = [0, 0], sizes = [2, 96], strides = [1, 1]} : vector<2x128xf32> to vector<2x96xf32>
    %231 = arith.negf %230 : vector<2x96xf32>
    %232 = math.exp %231 : vector<2x96xf32>
    %cst_59 = arith.constant 1.000000e+00 : f32
    %233 = vector.broadcast %cst_59 : f32 to vector<2x96xf32>
    %234 = arith.addf %233, %232 : vector<2x96xf32>
    %235 = arith.divf %233, %234 : vector<2x96xf32>
    %236 = vector.extract_strided_slice %229 {offsets = [0, 96], sizes = [2, 32], strides = [1, 1]} : vector<2x128xf32> to vector<2x32xf32>
    %237 = math.tanh %236 : vector<2x32xf32>
    %238 = vector.extract_strided_slice %235 {offsets = [0, 0], sizes = [2, 32], strides = [1, 1]} : vector<2x96xf32> to vector<2x32xf32>
    %239 = vector.extract_strided_slice %235 {offsets = [0, 32], sizes = [2, 32], strides = [1, 1]} : vector<2x96xf32> to vector<2x32xf32>
    %240 = vector.extract_strided_slice %235 {offsets = [0, 64], sizes = [2, 32], strides = [1, 1]} : vector<2x96xf32> to vector<2x32xf32>
    %241 = arith.mulf %239, %220 : vector<2x32xf32>
    %242 = arith.mulf %238, %237 : vector<2x32xf32>
    %243 = arith.addf %241, %242 : vector<2x32xf32>
    %244 = math.tanh %243 : vector<2x32xf32>
    %245 = arith.mulf %240, %244 : vector<2x32xf32>
    %c2_60 = arith.constant 2 : index
    %c0_61 = arith.constant 0 : index
    %c0_62 = arith.constant 0 : index
    %246 = vector.load %arg7[%c2_60, %c0_61, %c0_62] : memref<8x32x128xf32, #tpu.memory_space<vmem>>, vector<1x32x128xf32>
    %247 = vector.shape_cast %246 : vector<1x32x128xf32> to vector<32x128xf32>
    %cst_63 = arith.constant dense<0.000000e+00> : vector<2x128xf32>
    %248 = tpu.matmul %245, %247, %cst_63 {dimension_numbers = #tpu.dot_dimension_numbers<[1], [0], [0], [1], [0, 0, 1, 1], [], []>} : vector<2x32xf32>, vector<32x128xf32>, vector<2x128xf32> -> vector<2x128xf32>
    %249 = arith.addf %226, %248 : vector<2x128xf32>
    %250 = vector.extract_strided_slice %174 {offsets = [6, 0], sizes = [2, 128], strides = [1, 1]} : vector<16x128xf32> to vector<2x128xf32>
    %cst_64 = arith.constant dense<0.000000e+00> : vector<2x128xf32>
    %251 = tpu.matmul %245, %175, %cst_64 {dimension_numbers = #tpu.dot_dimension_numbers<[1], [0], [0], [1], [0, 0, 1, 1], [], []>} : vector<2x32xf32>, vector<32x128xf32>, vector<2x128xf32> -> vector<2x128xf32>
    %252 = arith.addf %250, %251 : vector<2x128xf32>
    %253 = vector.extract_strided_slice %252 {offsets = [0, 0], sizes = [2, 96], strides = [1, 1]} : vector<2x128xf32> to vector<2x96xf32>
    %254 = arith.negf %253 : vector<2x96xf32>
    %255 = math.exp %254 : vector<2x96xf32>
    %cst_65 = arith.constant 1.000000e+00 : f32
    %256 = vector.broadcast %cst_65 : f32 to vector<2x96xf32>
    %257 = arith.addf %256, %255 : vector<2x96xf32>
    %258 = arith.divf %256, %257 : vector<2x96xf32>
    %259 = vector.extract_strided_slice %252 {offsets = [0, 96], sizes = [2, 32], strides = [1, 1]} : vector<2x128xf32> to vector<2x32xf32>
    %260 = math.tanh %259 : vector<2x32xf32>
    %261 = vector.extract_strided_slice %258 {offsets = [0, 0], sizes = [2, 32], strides = [1, 1]} : vector<2x96xf32> to vector<2x32xf32>
    %262 = vector.extract_strided_slice %258 {offsets = [0, 32], sizes = [2, 32], strides = [1, 1]} : vector<2x96xf32> to vector<2x32xf32>
    %263 = vector.extract_strided_slice %258 {offsets = [0, 64], sizes = [2, 32], strides = [1, 1]} : vector<2x96xf32> to vector<2x32xf32>
    %264 = arith.mulf %262, %243 : vector<2x32xf32>
    %265 = arith.mulf %261, %260 : vector<2x32xf32>
    %266 = arith.addf %264, %265 : vector<2x32xf32>
    %267 = math.tanh %266 : vector<2x32xf32>
    %268 = arith.mulf %263, %267 : vector<2x32xf32>
    %c3 = arith.constant 3 : index
    %c0_66 = arith.constant 0 : index
    %c0_67 = arith.constant 0 : index
    %269 = vector.load %arg7[%c3, %c0_66, %c0_67] : memref<8x32x128xf32, #tpu.memory_space<vmem>>, vector<1x32x128xf32>
    %270 = vector.shape_cast %269 : vector<1x32x128xf32> to vector<32x128xf32>
    %cst_68 = arith.constant dense<0.000000e+00> : vector<2x128xf32>
    %271 = tpu.matmul %268, %270, %cst_68 {dimension_numbers = #tpu.dot_dimension_numbers<[1], [0], [0], [1], [0, 0, 1, 1], [], []>} : vector<2x32xf32>, vector<32x128xf32>, vector<2x128xf32> -> vector<2x128xf32>
    %272 = arith.addf %249, %271 : vector<2x128xf32>
    %273 = vector.extract_strided_slice %174 {offsets = [8, 0], sizes = [2, 128], strides = [1, 1]} : vector<16x128xf32> to vector<2x128xf32>
    %cst_69 = arith.constant dense<0.000000e+00> : vector<2x128xf32>
    %274 = tpu.matmul %268, %175, %cst_69 {dimension_numbers = #tpu.dot_dimension_numbers<[1], [0], [0], [1], [0, 0, 1, 1], [], []>} : vector<2x32xf32>, vector<32x128xf32>, vector<2x128xf32> -> vector<2x128xf32>
    %275 = arith.addf %273, %274 : vector<2x128xf32>
    %276 = vector.extract_strided_slice %275 {offsets = [0, 0], sizes = [2, 96], strides = [1, 1]} : vector<2x128xf32> to vector<2x96xf32>
    %277 = arith.negf %276 : vector<2x96xf32>
    %278 = math.exp %277 : vector<2x96xf32>
    %cst_70 = arith.constant 1.000000e+00 : f32
    %279 = vector.broadcast %cst_70 : f32 to vector<2x96xf32>
    %280 = arith.addf %279, %278 : vector<2x96xf32>
    %281 = arith.divf %279, %280 : vector<2x96xf32>
    %282 = vector.extract_strided_slice %275 {offsets = [0, 96], sizes = [2, 32], strides = [1, 1]} : vector<2x128xf32> to vector<2x32xf32>
    %283 = math.tanh %282 : vector<2x32xf32>
    %284 = vector.extract_strided_slice %281 {offsets = [0, 0], sizes = [2, 32], strides = [1, 1]} : vector<2x96xf32> to vector<2x32xf32>
    %285 = vector.extract_strided_slice %281 {offsets = [0, 32], sizes = [2, 32], strides = [1, 1]} : vector<2x96xf32> to vector<2x32xf32>
    %286 = vector.extract_strided_slice %281 {offsets = [0, 64], sizes = [2, 32], strides = [1, 1]} : vector<2x96xf32> to vector<2x32xf32>
    %287 = arith.mulf %285, %266 : vector<2x32xf32>
    %288 = arith.mulf %284, %283 : vector<2x32xf32>
    %289 = arith.addf %287, %288 : vector<2x32xf32>
    %290 = math.tanh %289 : vector<2x32xf32>
    %291 = arith.mulf %286, %290 : vector<2x32xf32>
    %c4_71 = arith.constant 4 : index
    %c0_72 = arith.constant 0 : index
    %c0_73 = arith.constant 0 : index
    %292 = vector.load %arg7[%c4_71, %c0_72, %c0_73] : memref<8x32x128xf32, #tpu.memory_space<vmem>>, vector<1x32x128xf32>
    %293 = vector.shape_cast %292 : vector<1x32x128xf32> to vector<32x128xf32>
    %cst_74 = arith.constant dense<0.000000e+00> : vector<2x128xf32>
    %294 = tpu.matmul %291, %293, %cst_74 {dimension_numbers = #tpu.dot_dimension_numbers<[1], [0], [0], [1], [0, 0, 1, 1], [], []>} : vector<2x32xf32>, vector<32x128xf32>, vector<2x128xf32> -> vector<2x128xf32>
    %295 = arith.addf %272, %294 : vector<2x128xf32>
    %296 = vector.extract_strided_slice %174 {offsets = [10, 0], sizes = [2, 128], strides = [1, 1]} : vector<16x128xf32> to vector<2x128xf32>
    %cst_75 = arith.constant dense<0.000000e+00> : vector<2x128xf32>
    %297 = tpu.matmul %291, %175, %cst_75 {dimension_numbers = #tpu.dot_dimension_numbers<[1], [0], [0], [1], [0, 0, 1, 1], [], []>} : vector<2x32xf32>, vector<32x128xf32>, vector<2x128xf32> -> vector<2x128xf32>
    %298 = arith.addf %296, %297 : vector<2x128xf32>
    %299 = vector.extract_strided_slice %298 {offsets = [0, 0], sizes = [2, 96], strides = [1, 1]} : vector<2x128xf32> to vector<2x96xf32>
    %300 = arith.negf %299 : vector<2x96xf32>
    %301 = math.exp %300 : vector<2x96xf32>
    %cst_76 = arith.constant 1.000000e+00 : f32
    %302 = vector.broadcast %cst_76 : f32 to vector<2x96xf32>
    %303 = arith.addf %302, %301 : vector<2x96xf32>
    %304 = arith.divf %302, %303 : vector<2x96xf32>
    %305 = vector.extract_strided_slice %298 {offsets = [0, 96], sizes = [2, 32], strides = [1, 1]} : vector<2x128xf32> to vector<2x32xf32>
    %306 = math.tanh %305 : vector<2x32xf32>
    %307 = vector.extract_strided_slice %304 {offsets = [0, 0], sizes = [2, 32], strides = [1, 1]} : vector<2x96xf32> to vector<2x32xf32>
    %308 = vector.extract_strided_slice %304 {offsets = [0, 32], sizes = [2, 32], strides = [1, 1]} : vector<2x96xf32> to vector<2x32xf32>
    %309 = vector.extract_strided_slice %304 {offsets = [0, 64], sizes = [2, 32], strides = [1, 1]} : vector<2x96xf32> to vector<2x32xf32>
    %310 = arith.mulf %308, %289 : vector<2x32xf32>
    %311 = arith.mulf %307, %306 : vector<2x32xf32>
    %312 = arith.addf %310, %311 : vector<2x32xf32>
    %313 = math.tanh %312 : vector<2x32xf32>
    %314 = arith.mulf %309, %313 : vector<2x32xf32>
    %c5 = arith.constant 5 : index
    %c0_77 = arith.constant 0 : index
    %c0_78 = arith.constant 0 : index
    %315 = vector.load %arg7[%c5, %c0_77, %c0_78] : memref<8x32x128xf32, #tpu.memory_space<vmem>>, vector<1x32x128xf32>
    %316 = vector.shape_cast %315 : vector<1x32x128xf32> to vector<32x128xf32>
    %cst_79 = arith.constant dense<0.000000e+00> : vector<2x128xf32>
    %317 = tpu.matmul %314, %316, %cst_79 {dimension_numbers = #tpu.dot_dimension_numbers<[1], [0], [0], [1], [0, 0, 1, 1], [], []>} : vector<2x32xf32>, vector<32x128xf32>, vector<2x128xf32> -> vector<2x128xf32>
    %318 = arith.addf %295, %317 : vector<2x128xf32>
    %319 = vector.extract_strided_slice %174 {offsets = [12, 0], sizes = [2, 128], strides = [1, 1]} : vector<16x128xf32> to vector<2x128xf32>
    %cst_80 = arith.constant dense<0.000000e+00> : vector<2x128xf32>
    %320 = tpu.matmul %314, %175, %cst_80 {dimension_numbers = #tpu.dot_dimension_numbers<[1], [0], [0], [1], [0, 0, 1, 1], [], []>} : vector<2x32xf32>, vector<32x128xf32>, vector<2x128xf32> -> vector<2x128xf32>
    %321 = arith.addf %319, %320 : vector<2x128xf32>
    %322 = vector.extract_strided_slice %321 {offsets = [0, 0], sizes = [2, 96], strides = [1, 1]} : vector<2x128xf32> to vector<2x96xf32>
    %323 = arith.negf %322 : vector<2x96xf32>
    %324 = math.exp %323 : vector<2x96xf32>
    %cst_81 = arith.constant 1.000000e+00 : f32
    %325 = vector.broadcast %cst_81 : f32 to vector<2x96xf32>
    %326 = arith.addf %325, %324 : vector<2x96xf32>
    %327 = arith.divf %325, %326 : vector<2x96xf32>
    %328 = vector.extract_strided_slice %321 {offsets = [0, 96], sizes = [2, 32], strides = [1, 1]} : vector<2x128xf32> to vector<2x32xf32>
    %329 = math.tanh %328 : vector<2x32xf32>
    %330 = vector.extract_strided_slice %327 {offsets = [0, 0], sizes = [2, 32], strides = [1, 1]} : vector<2x96xf32> to vector<2x32xf32>
    %331 = vector.extract_strided_slice %327 {offsets = [0, 32], sizes = [2, 32], strides = [1, 1]} : vector<2x96xf32> to vector<2x32xf32>
    %332 = vector.extract_strided_slice %327 {offsets = [0, 64], sizes = [2, 32], strides = [1, 1]} : vector<2x96xf32> to vector<2x32xf32>
    %333 = arith.mulf %331, %312 : vector<2x32xf32>
    %334 = arith.mulf %330, %329 : vector<2x32xf32>
    %335 = arith.addf %333, %334 : vector<2x32xf32>
    %336 = math.tanh %335 : vector<2x32xf32>
    %337 = arith.mulf %332, %336 : vector<2x32xf32>
    %c6_82 = arith.constant 6 : index
    %c0_83 = arith.constant 0 : index
    %c0_84 = arith.constant 0 : index
    %338 = vector.load %arg7[%c6_82, %c0_83, %c0_84] : memref<8x32x128xf32, #tpu.memory_space<vmem>>, vector<1x32x128xf32>
    %339 = vector.shape_cast %338 : vector<1x32x128xf32> to vector<32x128xf32>
    %cst_85 = arith.constant dense<0.000000e+00> : vector<2x128xf32>
    %340 = tpu.matmul %337, %339, %cst_85 {dimension_numbers = #tpu.dot_dimension_numbers<[1], [0], [0], [1], [0, 0, 1, 1], [], []>} : vector<2x32xf32>, vector<32x128xf32>, vector<2x128xf32> -> vector<2x128xf32>
    %341 = arith.addf %318, %340 : vector<2x128xf32>
    %342 = vector.extract_strided_slice %174 {offsets = [14, 0], sizes = [2, 128], strides = [1, 1]} : vector<16x128xf32> to vector<2x128xf32>
    %cst_86 = arith.constant dense<0.000000e+00> : vector<2x128xf32>
    %343 = tpu.matmul %337, %175, %cst_86 {dimension_numbers = #tpu.dot_dimension_numbers<[1], [0], [0], [1], [0, 0, 1, 1], [], []>} : vector<2x32xf32>, vector<32x128xf32>, vector<2x128xf32> -> vector<2x128xf32>
    %344 = arith.addf %342, %343 : vector<2x128xf32>
    %345 = vector.extract_strided_slice %344 {offsets = [0, 0], sizes = [2, 96], strides = [1, 1]} : vector<2x128xf32> to vector<2x96xf32>
    %346 = arith.negf %345 : vector<2x96xf32>
    %347 = math.exp %346 : vector<2x96xf32>
    %cst_87 = arith.constant 1.000000e+00 : f32
    %348 = vector.broadcast %cst_87 : f32 to vector<2x96xf32>
    %349 = arith.addf %348, %347 : vector<2x96xf32>
    %350 = arith.divf %348, %349 : vector<2x96xf32>
    %351 = vector.extract_strided_slice %344 {offsets = [0, 96], sizes = [2, 32], strides = [1, 1]} : vector<2x128xf32> to vector<2x32xf32>
    %352 = math.tanh %351 : vector<2x32xf32>
    %353 = vector.extract_strided_slice %350 {offsets = [0, 0], sizes = [2, 32], strides = [1, 1]} : vector<2x96xf32> to vector<2x32xf32>
    %354 = vector.extract_strided_slice %350 {offsets = [0, 32], sizes = [2, 32], strides = [1, 1]} : vector<2x96xf32> to vector<2x32xf32>
    %355 = vector.extract_strided_slice %350 {offsets = [0, 64], sizes = [2, 32], strides = [1, 1]} : vector<2x96xf32> to vector<2x32xf32>
    %356 = arith.mulf %354, %335 : vector<2x32xf32>
    %357 = arith.mulf %353, %352 : vector<2x32xf32>
    %358 = arith.addf %356, %357 : vector<2x32xf32>
    %359 = math.tanh %358 : vector<2x32xf32>
    %360 = arith.mulf %355, %359 : vector<2x32xf32>
    %c7 = arith.constant 7 : index
    %c0_88 = arith.constant 0 : index
    %c0_89 = arith.constant 0 : index
    %361 = vector.load %arg7[%c7, %c0_88, %c0_89] : memref<8x32x128xf32, #tpu.memory_space<vmem>>, vector<1x32x128xf32>
    %362 = vector.shape_cast %361 : vector<1x32x128xf32> to vector<32x128xf32>
    %cst_90 = arith.constant dense<0.000000e+00> : vector<2x128xf32>
    %363 = tpu.matmul %360, %362, %cst_90 {dimension_numbers = #tpu.dot_dimension_numbers<[1], [0], [0], [1], [0, 0, 1, 1], [], []>} : vector<2x32xf32>, vector<32x128xf32>, vector<2x128xf32> -> vector<2x128xf32>
    %364 = arith.addf %341, %363 : vector<2x128xf32>
    %c0_91 = arith.constant 0 : index
    %c0_92 = arith.constant 0 : index
    %365 = vector.load %arg9[%c0_91, %c0_92] : memref<2x128xf32, #tpu.memory_space<vmem>>, vector<2x128xf32>
    tpu.vector_store %arg9[%c0_91, %c0_92], %364 {strides = array<i32>} : memref<2x128xf32, #tpu.memory_space<vmem>>, vector<2x128xf32>,
    return
  }
}

</mosaic_0001>

<bundles_post_ra>
// kernel: tpu_custom_call.1
= control target key start
LH: loop header
LB: loop body
LE: loop exit
PB: predicated region body
PF: predicated region fallthrough
CT: control target
= control target key end

     0   :  { %14 = vsyncpa [#allocation4], 0  ;;  %s3899_s0 = inlined_call_operand.hbm [shape: f32[16,32], index: 0, kind: input, shape index: {}]   ;;  %s3900_s1 = inlined_call_operand.hbm [shape: f32[32,128], index: 1, kind: input, shape index: {}]   ;;  %s3901_s2 = inlined_call_operand.hbm [shape: f32[32,128], index: 2, kind: input, shape index: {}]   ;;  %s3902_s3 = inlined_call_operand.vmem [shape: f32[1,128], index: 3, kind: input, shape index: {}]   ;;  %s3903_s4 = inlined_call_operand.hbm [shape: f32[32,128], index: 4, kind: input, shape index: {}]   ;;  %s3904_s5 = inlined_call_operand.hbm [shape: f32[32,128], index: 5, kind: input, shape index: {}]   ;;  %s3905_s6 = inlined_call_operand.vmem [shape: f32[1,128], index: 6, kind: input, shape index: {}]   ;;  %s3906_s7 = inlined_call_operand.hbm [shape: f32[8,32,128], index: 7, kind: input, shape index: {}]   ;;  %s3907_s8 = inlined_call_operand.vmem [shape: f32[1,128], index: 8, kind: input, shape index: {}]   ;;  %s3908_s9 = inlined_call_operand.hbm [shape: f32[2,128], index: 9, kind: output, shape index: {}]  }
   0x1   :  { %15 = vsyncpa [#allocation7], 0 }
   0x2   :  { %16 = vsyncpa [#allocation10], 0 }
   0x3   :  { %17 = vsyncpa [#allocation13], 0 }
   0x4   :  { %18 = vsyncpa [#allocation5], 0  ;;  %s3419_s30 = smov [#allocation6]   ;;  %s3420_s11 = smov [#allocation9]  }
   0x5   :  { %s36_s10 = sshll.u32 %s3419_s30, 4  ;;  %s62_s12 = sshll.u32 %s3420_s11, 4  ;;  %s37_s10 = int_to_ptr.vmem [resolvable:$true] %s36_s10  ;;  %s63_s12 = int_to_ptr.vmem [resolvable:$true] %s62_s12 }
   0x6   :  { %s3277_s13 = scalar_lea.vmem %s37_s10, 512  ;;  %p3282_p1 = scmp.lt.s32.totalorder %s37_s10, %s37_s10 }
   0x7   :  { %p3278_p0 = scmp.ne.s32.totalorder %s37_s10, %s3277_s13  ;;  %p3283_p2 = scmp.lt.s32.totalorder %s3277_s13, %s3277_s13 }
   0x9   :  { %p3284_p3 = por %p3283_p2, %p3282_p1 }
   0xb   :  { %p3285_p4 = pnand %p3284_p3, %p3278_p0 }
   0xd   :  { %3288 = shalt.err (!%p3285_p4)
}
   0xe   :  { %s3421_s14 = smov 128   ;;  %s3422_s15 = smov 8  }
   0xf   :  { %42 = dma.hbm_to_vmem [thread:$0]  %s3900_s1, 512, %s37_s10, [#allocation7], %s3421_s14, %s3421_s14, %s3422_s15  }
  0x10   :  { %s3297_s18 = scalar_lea.vmem %s63_s12, 512  ;;  %p3302_p6 = scmp.lt.s32.totalorder %s63_s12, %s63_s12 }
  0x11   :  { %p3298_p5 = scmp.ne.s32.totalorder %s63_s12, %s3297_s18  ;;  %p3303_p7 = scmp.lt.s32.totalorder %s3297_s18, %s3297_s18 }
  0x13   :  { %p3304_p8 = por %p3303_p7, %p3302_p6 }
  0x15   :  { %p3305_p9 = pnand %p3304_p8, %p3298_p5 }
  0x17   :  { %3308 = shalt.err (!%p3305_p9)
}
  0x18   :  { %68 = dma.hbm_to_vmem [thread:$0]  %s3903_s4, 512, %s63_s12, [#allocation10], %s3421_s14, %s3421_s14, %s3422_s15  }
  0x19   :  { %s3423_s21 = smov [#allocation3]   ;;  %s3424_s23 = smov [#allocation8]  }
  0x1a   :  { %s24_s22 = sshll.u32 %s3423_s21, 4  ;;  %s48_s24 = sshll.u32 %s3424_s23, 4  ;;  %s25_s22 = int_to_ptr.vmem [resolvable:$true] %s24_s22  ;;  %s49_s24 = int_to_ptr.vmem [resolvable:$true] %s48_s24 }
  0x1b   :  { %s3317_s1 = scalar_lea.vmem %s25_s22, 256  ;;  %p3322_p11 = scmp.lt.s32.totalorder %s25_s22, %s25_s22 }
  0x1c   :  { %p3318_p10 = scmp.ne.s32.totalorder %s25_s22, %s3317_s1  ;;  %p3323_p12 = scmp.lt.s32.totalorder %s3317_s1, %s3317_s1 }
  0x1e   :  { %p3324_p13 = por %p3323_p12, %p3322_p11 }
  0x20   :  { %p3325_p0 = pnand %p3324_p13, %p3318_p10 }
  0x22   :  { %3328 = shalt.err (!%p3325_p0)
}
  0x23   :  { %30 = dma.hbm_to_vmem [thread:$0]  %s3899_s0, 256, %s25_s22, [#allocation4], %s3421_s14, %s3421_s14, %s3422_s15  }
  0x24   :  { %s3337_s4 = scalar_lea.vmem %s49_s24, 512  ;;  %p3342_p2 = scmp.lt.s32.totalorder %s49_s24, %s49_s24 }
  0x25   :  { %p3338_p1 = scmp.ne.s32.totalorder %s49_s24, %s3337_s4  ;;  %p3343_p3 = scmp.lt.s32.totalorder %s3337_s4, %s3337_s4 }
  0x27   :  { %p3344_p4 = por %p3343_p3, %p3342_p2 }
  0x29   :  { %p3345_p5 = pnand %p3344_p4, %p3338_p1 }
  0x2b   :  { %3348 = shalt.err (!%p3345_p5)
}
  0x2c   :  { %54 = dma.hbm_to_vmem [thread:$0]  %s3901_s2, 512, %s49_s24, [#allocation7], %s3421_s14, %s3421_s14, %s3422_s15  }
  0x2d   :  { %s3425_s29 = smov [#allocation11]   ;;  %s3426_s10 = smov [#allocation12]  }
  0x2e   :  { %s74_s30 = sshll.u32 %s3425_s29, 4  ;;  %s88_s11 = sshll.u32 %s3426_s10, 4  ;;  %s75_s30 = int_to_ptr.vmem [resolvable:$true] %s74_s30  ;;  %s89_s11 = int_to_ptr.vmem [resolvable:$true] %s88_s11 }
  0x2f   :  { %s3357_s0 = scalar_lea.vmem %s75_s30, 512  ;;  %p3362_p7 = scmp.lt.s32.totalorder %s75_s30, %s75_s30 }
  0x30   :  { %p3358_p6 = scmp.ne.s32.totalorder %s75_s30, %s3357_s0  ;;  %p3363_p8 = scmp.lt.s32.totalorder %s3357_s0, %s3357_s0 }
  0x32   :  { %p3364_p9 = por %p3363_p8, %p3362_p7 }
  0x34   :  { %p3365_p10 = pnand %p3364_p9, %p3358_p6 }
  0x36   :  { %3368 = shalt.err (!%p3365_p10)
}
  0x37   :  { %80 = dma.hbm_to_vmem [thread:$0]  %s3904_s5, 512, %s75_s30, [#allocation10], %s3421_s14, %s3421_s14, %s3422_s15  }
  0x38   :  { %s3377_s2 = scalar_lea.vmem %s89_s11, 4096  ;;  %p3382_p12 = scmp.lt.s32.totalorder %s89_s11, %s89_s11 }
  0x39   :  { %p3378_p11 = scmp.ne.s32.totalorder %s89_s11, %s3377_s2  ;;  %p3383_p13 = scmp.lt.s32.totalorder %s3377_s2, %s3377_s2 }
  0x3b   :  { %p3384_p0 = por %p3383_p13, %p3382_p12 }
  0x3d   :  { %p3385_p1 = pnand %p3384_p0, %p3378_p11 }
  0x3f   :  { %3388 = shalt.err (!%p3385_p1)
}
  0x40   :  { %94 = dma.hbm_to_vmem [thread:$0]  %s3906_s7, 4096, %s89_s11, [#allocation13], %s3421_s14, %s3421_s14, %s3422_s15  }
  0x41   :  { %3409 = dma.done.wait [#allocation4], 256  }
  0x42   :  { %3410 = vsyncadd [#allocation4], 4294967040 }
  0x43   :  { %3411 = dma.done.wait [#allocation7], 1024  }
  0x44   :  { %3412 = vsyncadd [#allocation7], 4294966272 }
  0x45   :  { %3413 = dma.done.wait [#allocation10], 1024  }
  0x46   :  { %3414 = vsyncadd [#allocation10], 4294966272 }
  0x47   :  { %3415 = dma.done.wait [#allocation13], 4096  }
  0x48   :  { %3416 = vsyncadd [#allocation13], 4294963200  ;;  %v3427_v0 = vmov 0.0   ;;  %vm3428_vm0 = vmmov 0   ;;  %v120_v1 = vld [vmem:[#allocation6 + $0x18] sm:$0xff]  ;;  %v119_v2 = vld [vmem:[#allocation6 + $0x10] sm:$0xff] }
  0x49   :  { %2853 = vmatprep.subr.mxu1 %v3427_v0  ;;  %2861 = vmatprep.mubr.msk.f32.mxu1 %vm3428_vm0, %v3427_v0  ;;  %v3521_v3 = vld [vmem:[#allocation8 + $0x18] sm:$0xff]  ;;  %v3524_v4 = vld [vmem:[#allocation8 + $0x10] sm:$0xff]  ;;  %v118_v5 = vld [vmem:[#allocation6 + $0x8] sm:$0xff]  ;;  %vm128_vm1 = vcmask 261120   ;;  %s3429_s14 = smov 32   ;;  %vm316_vm2 = vcmask 254976  }
  0x4a   :  { %2842 = vmatprep.subr.mxu0 %v120_v1  ;;  %2854 = vmatpush3.msra.mxu1 %v3521_v3  ;;  %v115_v6 = vld [vmem:[#allocation3] sm:$0xff]  ;;  %v3528_v7 = vld [vmem:[#allocation8 + $0x8] sm:$0xff]  ;;  %v117_v8 = vld [vmem:[#allocation6] sm:$0xff]  ;;  %vm425_vm3 = vcmask 257026   ;;  %vm649_vm4 = vcmask 261126   ;;  %vm537_vm5 = vcmask 259076  }
  0x4b   :  { %2843 = vmatpush3.msra.mxu0 %v120_v1  ;;  %2855 = vmatprep.subr.mxu1 %v3427_v0  ;;  %v3532_v9 = vld [vmem:[#allocation8] sm:$0xff]  ;;  %v116_v10 = vld [vmem:[#allocation3 + $0x8] sm:$0xff] }
  0x4c   :  { %2844 = vmatprep.subr.mxu0 %v119_v2  ;;  %2856 = vmatpush3.msra.mxu1 %v3524_v4  ;;  %v2665_v11 = vld [vmem:[%s3902_s3] ss:$0 sm:$0xff]  ;;  %s3430_s3 = smov 64  }
  0x4d   :  { %2845 = vmatpush3.msra.mxu0 %v119_v2  ;;  %2857 = vmatprep.subr.mxu1 %v3427_v0 }
  0x4e   :  { %2846 = vmatprep.subr.mxu0 %v118_v5  ;;  %2850 = vmatprep.mubr.msk.f32.mxu0 %vm128_vm1, %v115_v6 }
  0x4f   :  { %2847 = vmatpush3.msra.mxu0 %v118_v5  ;;  %2858 = vmatpush3.msra.mxu1 %v3528_v7 }
  0x50   :  { %2848 = vmatprep.subr.mxu0 %v117_v8  ;;  %2859 = vmatprep.subr.mxu1 %v3427_v0 }
  0x51   :  { %2849 = vmatpush3.msra.mxu0 %v117_v8  ;;  %2860 = vmatpush3.msra.mxu1 %v3532_v9 }
  0x52   :  { %2851 = vmatmul.mubr.msk.f32.vlgmr.msra.gmra.mxu0 %vm128_vm1, %v116_v10  ;;  %2862 = vmatmul.mubr.f32.vlgmr.msra.gmra.mxu1 %v3427_v0 }
  0x53   :  { %2864 = vmatprep.subr.mxu0 %v3427_v0  ;;  %2872 = vmatprep.mubr.msk.f32.mxu0 %vm3428_vm0, %v3427_v0 }
  0x54   :  { %2865 = vmatpush3.msra.mxu0 %v3521_v3  ;;  %2875 = vmatprep.subr.mxu1 %v3427_v0 }
  0x55   :  { %2866 = vmatprep.subr.mxu0 %v3427_v0  ;;  %2876 = vmatpush3.msra.mxu1 %v3521_v3 }
  0x56   :  { %2867 = vmatpush3.msra.mxu0 %v3524_v4  ;;  %2877 = vmatprep.subr.mxu1 %v3427_v0 }
  0x57   :  { %2868 = vmatprep.subr.mxu0 %v3427_v0  ;;  %2878 = vmatpush3.msra.mxu1 %v3524_v4 }
  0x58   :  { %2869 = vmatpush3.msra.mxu0 %v3528_v7  ;;  %2879 = vmatprep.subr.mxu1 %v3427_v0 }
  0x59   :  { %2870 = vmatprep.subr.mxu0 %v3427_v0  ;;  %2880 = vmatpush3.msra.mxu1 %v3528_v7 }
  0x5a   :  { %2871 = vmatpush3.msra.mxu0 %v3532_v9  ;;  %2881 = vmatprep.subr.mxu1 %v3427_v0 }
  0x5b   :  { %2882 = vmatpush3.msra.mxu1 %v3532_v9  ;;  %2883 = vmatprep.mubr.msk.f32.mxu1 %vm3428_vm0, %v3427_v0 }
  0x5c   :  { %2886 = vmatprep.subr.mxu0 %v3427_v0  ;;  %2897 = vmatprep.subr.mxu1 %v3427_v0 }
 0x112   :  { %v2852_v12 = vpop.f32.mrf.mxu0  ;;  %v283_v13 = vpop.f32.mrf.mxu1 }
 0x113   :  { %v3564_v14 = vadd.f32 %v2852_v12, %v2665_v11 }
 0x114   :  { %v201_v15 = vpop.f32.mrf.mxu0  ;;  %v2863_v16 = vpop.f32.mrf.mxu1 }
 0x115   :  { %v3566_v17 = vadd.f32 %v2665_v11, %v201_v15 }
 0x117   :  { %v287_v18 = vadd.f32 %v283_v13, %v3566_v17 }
 0x119   :  { %3141 = vtanh.f32 %v287_v18  ;;  %v2668_v20 = vmul.f32 -1.442695, %v287_v18 }
 0x11b   :  { %3143 = vpow2.f32 %v2668_v20 }
 0x126   :  { %v3142_v19 = vpop.eup %3141 }
 0x127   :  { %297 = vrot.lane.b32.xlu0 %v3142_v19, %s3429_s14 }
 0x128   :  { %v3144_v21 = vpop.eup %3143 }
 0x129   :  { %v291_v22 = vadd.f32 1.0, %v3144_v21 }
 0x12b   :  { %3145 = vrcp.f32 %v291_v22 }
 0x138   :  { %v3146_v23 = vpop.eup %3145 }
 0x139   :  { %v295_v26 = vmul.f32 0.0, %v3146_v23 }
 0x199   :  { %v298_v24 = vpop.permute.xlu0 %297 }
 0x19a   :  { %v300_v25 = vmul.f32 %v3146_v23, %v298_v24 }
 0x19c   :  { %302 = vrot.lane.b32.xlu0 %v300_v25, %s3429_s14 }
 0x20e   :  { %v303_v27 = vpop.permute.xlu0 %302 }
 0x20f   :  { %v305_v28 = vadd.f32 %v303_v27, %v295_v26 }
 0x211   :  { %3147 = vtanh.f32 %v305_v28  ;;  %v402_v44 = vrot.slane %v305_v28, 6 }
 0x21e   :  { %v3148_v29 = vpop.eup %3147 }
 0x21f   :  { %308 = vrot.lane.b32.xlu1 %v3148_v29, %s3429_s14 }
 0x291   :  { %v309_v30 = vpop.permute.xlu1 %308 }
 0x292   :  { %v311_v31 = vmul.f32 %v3146_v23, %v309_v30 }
 0x294   :  { %313 = vrot.lane.b32.xlu1 %v311_v31, %s3430_s3 }
 0x306   :  { %v314_v32 = vpop.permute.xlu1 %313 }
 0x307   :  { %317 = vst.msk [vmem:[#allocation2] sm:$0x3] %vm316_vm2, %v314_v32  ;;  %2873 = vmatmul.mubr.msk.f32.vlgmr.msra.gmra.mxu0 %vm128_vm1, %v314_v32 }
 0x308   :  { %2887 = vmatpush3.msra.mxu0 %v3521_v3  ;;  %2894 = vmatprep.mubr.msk.f32.mxu0 %vm3428_vm0, %v3427_v0 }
 0x309   :  { %2888 = vmatprep.subr.mxu0 %v3427_v0 }
 0x30a   :  { %2889 = vmatpush3.msra.mxu0 %v3524_v4 }
 0x30b   :  { %2890 = vmatprep.subr.mxu0 %v3427_v0 }
 0x30c   :  { %2891 = vmatpush3.msra.mxu0 %v3528_v7 }
 0x30d   :  { %2892 = vmatprep.subr.mxu0 %v3427_v0 }
 0x30e   :  { %2893 = vmatpush3.msra.mxu0 %v3532_v9 }
 0x30f   :  { %2908 = vmatprep.subr.mxu0 %v3427_v0 }
 0x3c7   :  { %v386_v33 = vpop.f32.mrf.mxu0 }
 0x3c8   :  { %v391_v34 = vrot.slane %v386_v33, 6 }
 0x3c9   :  { %v2874_v35 = vpop.f32.mrf.mxu0 }
 0x3ca   :  { %v393_v36 = vadd.f32 %v391_v34, %v3566_v17 }
 0x3cc   :  { %3149 = vtanh.f32 %v393_v36  ;;  %v2670_v38 = vmul.f32 -1.442695, %v393_v36 }
 0x3ce   :  { %3151 = vpow2.f32 %v2670_v38 }
 0x3d9   :  { %v3150_v37 = vpop.eup %3149 }
 0x3da   :  { %406 = vrot.lane.b32.xlu0 %v3150_v37, %s3429_s14 }
 0x3db   :  { %v3152_v39 = vpop.eup %3151 }
 0x3dc   :  { %v397_v40 = vadd.f32 1.0, %v3152_v39 }
 0x3de   :  { %3153 = vrcp.f32 %v397_v40 }
 0x3eb   :  { %v3154_v41 = vpop.eup %3153 }
 0x3ec   :  { %v404_v45 = vmul.f32 %v3154_v41, %v402_v44 }
 0x44c   :  { %v407_v42 = vpop.permute.xlu0 %406 }
 0x44d   :  { %v409_v43 = vmul.f32 %v3154_v41, %v407_v42 }
 0x44f   :  { %411 = vrot.lane.b32.xlu1 %v409_v43, %s3429_s14 }
 0x4c1   :  { %v412_v46 = vpop.permute.xlu1 %411 }
 0x4c2   :  { %v414_v47 = vadd.f32 %v412_v46, %v404_v45 }
 0x4c4   :  { %3155 = vtanh.f32 %v414_v47  ;;  %v514_v1 = vrot.slane %v414_v47, 6 }
 0x4d1   :  { %v3156_v48 = vpop.eup %3155 }
 0x4d2   :  { %417 = vrot.lane.b32.xlu0 %v3156_v48, %s3429_s14 }
 0x544   :  { %v418_v49 = vpop.permute.xlu0 %417 }
 0x545   :  { %v3589_v50 = vmul.f32 %v3154_v41, %v418_v49 }
 0x547   :  { %v427_v51 = vrot.slane %v3589_v50, 2 }
 0x549   :  { %428 = vrot.lane.b32.xlu1 %v427_v51, %s3430_s3 }
 0x5bb   :  { %v429_v52 = vpop.permute.xlu1 %428 }
 0x5bc   :  { %2884 = vmatmul.mubr.msk.f32.vlgmr.msra.gmra.mxu1 %vm128_vm1, %v429_v52 }
 0x5bd   :  { %2898 = vmatpush3.msra.mxu1 %v3521_v3  ;;  %2905 = vmatprep.mubr.msk.f32.mxu1 %vm3428_vm0, %v3427_v0 }
 0x5be   :  { %2899 = vmatprep.subr.mxu1 %v3427_v0 }
 0x5bf   :  { %2900 = vmatpush3.msra.mxu1 %v3524_v4 }
 0x5c0   :  { %2901 = vmatprep.subr.mxu1 %v3427_v0 }
 0x5c1   :  { %2902 = vmatpush3.msra.mxu1 %v3528_v7 }
 0x5c2   :  { %2903 = vmatprep.subr.mxu1 %v3427_v0 }
 0x5c3   :  { %2904 = vmatpush3.msra.mxu1 %v3532_v9 }
 0x5c4   :  { %2919 = vmatprep.subr.mxu1 %v3427_v0 }
 0x67c   :  { %v498_v53 = vpop.f32.mrf.mxu1 }
 0x67d   :  { %v503_v54 = vrot.slane %v498_v53, 4 }
 0x67e   :  { %v2885_v55 = vpop.f32.mrf.mxu1 }
 0x67f   :  { %v505_v56 = vadd.f32 %v503_v54, %v3566_v17 }
 0x681   :  { %3157 = vtanh.f32 %v505_v56  ;;  %v2672_v58 = vmul.f32 -1.442695, %v505_v56 }
 0x683   :  { %3159 = vpow2.f32 %v2672_v58 }
 0x68e   :  { %v3158_v57 = vpop.eup %3157 }
 0x68f   :  { %518 = vrot.lane.b32.xlu0 %v3158_v57, %s3429_s14 }
 0x690   :  { %v3160_v59 = vpop.eup %3159 }
 0x691   :  { %v509_v60 = vadd.f32 1.0, %v3160_v59 }
 0x693   :  { %3161 = vrcp.f32 %v509_v60 }
 0x6a0   :  { %v3162_v61 = vpop.eup %3161 }
 0x6a1   :  { %v516_v2 = vmul.f32 %v3162_v61, %v514_v1 }
 0x701   :  { %v519_v62 = vpop.permute.xlu0 %518 }
 0x702   :  { %v521_v63 = vmul.f32 %v3162_v61, %v519_v62 }
 0x704   :  { %523 = vrot.lane.b32.xlu1 %v521_v63, %s3429_s14 }
 0x776   :  { %v524_v5 = vpop.permute.xlu1 %523 }
 0x777   :  { %v526_v6 = vadd.f32 %v524_v5, %v516_v2 }
 0x779   :  { %3163 = vtanh.f32 %v526_v6  ;;  %v626_v27 = vrot.slane %v526_v6, 6 }
 0x786   :  { %v3164_v8 = vpop.eup %3163 }
 0x787   :  { %529 = vrot.lane.b32.xlu0 %v3164_v8, %s3429_s14 }
 0x7f9   :  { %v530_v10 = vpop.permute.xlu0 %529 }
 0x7fa   :  { %v3608_v11 = vmul.f32 %v3162_v61, %v530_v10 }
 0x7fc   :  { %v539_v12 = vrot.slane %v3608_v11, 4 }
 0x7fe   :  { %540 = vrot.lane.b32.xlu1 %v539_v12, %s3430_s3 }
 0x870   :  { %v541_v13 = vpop.permute.xlu1 %540 }
 0x871   :  { %2895 = vmatmul.mubr.msk.f32.vlgmr.msra.gmra.mxu0 %vm128_vm1, %v541_v13 }
 0x872   :  { %2909 = vmatpush3.msra.mxu0 %v3521_v3  ;;  %2916 = vmatprep.mubr.msk.f32.mxu0 %vm3428_vm0, %v3427_v0 }
 0x873   :  { %2910 = vmatprep.subr.mxu0 %v3427_v0 }
 0x874   :  { %2911 = vmatpush3.msra.mxu0 %v3524_v4 }
 0x875   :  { %2912 = vmatprep.subr.mxu0 %v3427_v0 }
 0x876   :  { %2913 = vmatpush3.msra.mxu0 %v3528_v7 }
 0x877   :  { %2914 = vmatprep.subr.mxu0 %v3427_v0 }
 0x878   :  { %2915 = vmatpush3.msra.mxu0 %v3532_v9 }
 0x879   :  { %2930 = vmatprep.subr.mxu0 %v3427_v0 }
 0x931   :  { %v610_v15 = vpop.f32.mrf.mxu0 }
 0x932   :  { %v615_v16 = vrot.slane %v610_v15, 2 }
 0x933   :  { %v2896_v18 = vpop.f32.mrf.mxu0 }
 0x934   :  { %v617_v19 = vadd.f32 %v615_v16, %v3566_v17 }
 0x936   :  { %3165 = vtanh.f32 %v617_v19  ;;  %v2674_v21 = vmul.f32 -1.442695, %v617_v19 }
 0x938   :  { %3167 = vpow2.f32 %v2674_v21 }
 0x943   :  { %v3166_v20 = vpop.eup %3165 }
 0x944   :  { %630 = vrot.lane.b32.xlu0 %v3166_v20, %s3429_s14 }
 0x945   :  { %v3168_v22 = vpop.eup %3167 }
 0x946   :  { %v621_v23 = vadd.f32 1.0, %v3168_v22 }
 0x948   :  { %3169 = vrcp.f32 %v621_v23 }
 0x955   :  { %v3170_v24 = vpop.eup %3169 }
 0x956   :  { %v628_v28 = vmul.f32 %v3170_v24, %v626_v27 }
 0x9b6   :  { %v631_v25 = vpop.permute.xlu0 %630 }
 0x9b7   :  { %v633_v26 = vmul.f32 %v3170_v24, %v631_v25 }
 0x9b9   :  { %635 = vrot.lane.b32.xlu1 %v633_v26, %s3429_s14 }
 0xa2b   :  { %v636_v29 = vpop.permute.xlu1 %635 }
 0xa2c   :  { %v638_v30 = vadd.f32 %v636_v29, %v628_v28 }
 0xa2e   :  { %3171 = vtanh.f32 %v638_v30  ;;  %v735_v45 = vrot.slane %v638_v30, 6 }
 0xa3b   :  { %v3172_v17 = vpop.eup %3171 }
 0xa3c   :  { %641 = vrot.lane.b32.xlu0 %v3172_v17, %s3429_s14 }
 0xaae   :  { %v642_v31 = vpop.permute.xlu0 %641 }
 0xaaf   :  { %v3627_v32 = vmul.f32 %v3170_v24, %v642_v31 }
 0xab1   :  { %v651_v33 = vrot.slane %v3627_v32, 6 }
 0xab3   :  { %652 = vrot.lane.b32.xlu1 %v651_v33, %s3430_s3 }
 0xb25   :  { %v653_v34 = vpop.permute.xlu1 %652 }
 0xb26   :  { %2906 = vmatmul.mubr.msk.f32.vlgmr.msra.gmra.mxu1 %vm128_vm1, %v653_v34 }
 0xb27   :  { %2920 = vmatpush3.msra.mxu1 %v3521_v3  ;;  %2927 = vmatprep.mubr.msk.f32.mxu1 %vm3428_vm0, %v3427_v0 }
 0xb28   :  { %2921 = vmatprep.subr.mxu1 %v3427_v0 }
 0xb29   :  { %2922 = vmatpush3.msra.mxu1 %v3524_v4 }
 0xb2a   :  { %2923 = vmatprep.subr.mxu1 %v3427_v0 }
 0xb2b   :  { %2924 = vmatpush3.msra.mxu1 %v3528_v7 }
 0xb2c   :  { %2925 = vmatprep.subr.mxu1 %v3427_v0 }
 0xb2d   :  { %2926 = vmatpush3.msra.mxu1 %v3532_v9 }
 0xbe6   :  { %v722_v35 = vpop.f32.mrf.mxu1 }
 0xbe7   :  { %v726_v36 = vadd.f32 %v722_v35, %v3564_v14 }
 0xbe8   :  { %v2907_v37 = vpop.f32.mrf.mxu1 }
 0xbe9   :  { %3173 = vtanh.f32 %v726_v36  ;;  %v2676_v39 = vmul.f32 -1.442695, %v726_v36 }
 0xbeb   :  { %3175 = vpow2.f32 %v2676_v39 }
 0xbf6   :  { %v3174_v38 = vpop.eup %3173 }
 0xbf7   :  { %739 = vrot.lane.b32.xlu0 %v3174_v38, %s3429_s14 }
 0xbf8   :  { %v3176_v40 = vpop.eup %3175 }
 0xbf9   :  { %v730_v41 = vadd.f32 1.0, %v3176_v40 }
 0xbfb   :  { %3177 = vrcp.f32 %v730_v41 }
 0xc08   :  { %v3178_v42 = vpop.eup %3177 }
 0xc09   :  { %v737_v46 = vmul.f32 %v3178_v42, %v735_v45 }
 0xc69   :  { %v740_v43 = vpop.permute.xlu0 %739 }
 0xc6a   :  { %v742_v44 = vmul.f32 %v3178_v42, %v740_v43 }
 0xc6c   :  { %744 = vrot.lane.b32.xlu1 %v742_v44, %s3429_s14 }
 0xcde   :  { %v745_v47 = vpop.permute.xlu1 %744 }
 0xcdf   :  { %v747_v48 = vadd.f32 %v745_v47, %v737_v46 }
 0xce1   :  { %3179 = vtanh.f32 %v747_v48 }
 0xcee   :  { %v3180_v49 = vpop.eup %3179 }
 0xcef   :  { %750 = vrot.lane.b32.xlu0 %v3180_v49, %s3429_s14 }
 0xd61   :  { %v751_v51 = vpop.permute.xlu0 %750 }
 0xd62   :  { %v753_v52 = vmul.f32 %v3178_v42, %v751_v51  ;;  %v1094_v51 = vld [vmem:[#allocation9 + $0x18] sm:$0xff] }
 0xd63   :  { %2941 = vmatprep.subr.mxu1 %v1094_v51 }
 0xd64   :  { %755 = vrot.lane.b32.xlu1 %v753_v52, %s3430_s3  ;;  %v1093_v52 = vld [vmem:[#allocation9 + $0x10] sm:$0xff] }
 0xdd6   :  { %v756_v53 = vpop.permute.xlu1 %755 }
 0xdd7   :  { %758 = vst.msk [vmem:[#allocation2 + $0x8] sm:$0x3] %vm316_vm2, %v756_v53  ;;  %2917 = vmatmul.mubr.msk.f32.vlgmr.msra.gmra.mxu0 %vm128_vm1, %v756_v53  ;;  %v3691_v53 = vld [vmem:[#allocation11 + $0x18] sm:$0xff] }
 0xdd8   :  { %2931 = vmatpush3.msra.mxu0 %v3521_v3  ;;  %2938 = vmatprep.mubr.msk.f32.mxu0 %vm3428_vm0, %v3427_v0 }
 0xdd9   :  { %2932 = vmatprep.subr.mxu0 %v3427_v0 }
 0xdda   :  { %2933 = vmatpush3.msra.mxu0 %v3524_v4 }
 0xddb   :  { %2934 = vmatprep.subr.mxu0 %v3427_v0 }
 0xddc   :  { %2935 = vmatpush3.msra.mxu0 %v3528_v7 }
 0xddd   :  { %2936 = vmatprep.subr.mxu0 %v3427_v0 }
 0xdde   :  { %2937 = vmatpush3.msra.mxu0 %v3532_v9  ;;  %v843_v9 = vrot.slane %v747_v48, 6 }
 0xddf   :  { %2952 = vmatprep.subr.mxu0 %v3427_v0 }
 0xe97   :  { %v827_v54 = vpop.f32.mrf.mxu0 }
 0xe98   :  { %v832_v55 = vrot.slane %v827_v54, 6  ;;  %v1092_v54 = vld [vmem:[#allocation9 + $0x8] sm:$0xff] }
 0xe99   :  { %v2918_v3 = vpop.f32.mrf.mxu0 }
 0xe9a   :  { %v834_v56 = vadd.f32 %v832_v55, %v3564_v14  ;;  %v3694_v55 = vld [vmem:[#allocation11 + $0x10] sm:$0xff]  ;;  %v3697_v3 = vld [vmem:[#allocation11 + $0x8] sm:$0xff] }
 0xe9c   :  { %3181 = vtanh.f32 %v834_v56  ;;  %v2678_v4 = vmul.f32 -1.442695, %v834_v56  ;;  %v3703_v56 = vld [vmem:[#allocation11] sm:$0xff] }
 0xe9e   :  { %3183 = vpow2.f32 %v2678_v4 }
 0xea9   :  { %v3182_v57 = vpop.eup %3181 }
 0xeaa   :  { %847 = vrot.lane.b32.xlu0 %v3182_v57, %s3429_s14 }
 0xeab   :  { %v3184_v58 = vpop.eup %3183 }
 0xeac   :  { %v838_v59 = vadd.f32 1.0, %v3184_v58 }
 0xeae   :  { %3185 = vrcp.f32 %v838_v59 }
 0xebb   :  { %v3186_v7 = vpop.eup %3185 }
 0xebc   :  { %v845_v62 = vmul.f32 %v3186_v7, %v843_v9 }
 0xf1c   :  { %v848_v60 = vpop.permute.xlu0 %847 }
 0xf1d   :  { %v850_v61 = vmul.f32 %v3186_v7, %v848_v60 }
 0xf1f   :  { %852 = vrot.lane.b32.xlu1 %v850_v61, %s3429_s14 }
 0xf91   :  { %v853_v63 = vpop.permute.xlu1 %852 }
 0xf92   :  { %v855_v1 = vadd.f32 %v853_v63, %v845_v62  ;;  %v2683_v63 = vld [vmem:[%s3905_s6] ss:$0 sm:$0xff] }
 0xf94   :  { %3187 = vtanh.f32 %v855_v1  ;;  %v954_v25 = vrot.slane %v855_v1, 6 }
 0xfa1   :  { %v3188_v2 = vpop.eup %3187 }
 0xfa2   :  { %858 = vrot.lane.b32.xlu0 %v3188_v2, %s3429_s14 }
0x1014   :  { %v859_v5 = vpop.permute.xlu0 %858 }
0x1015   :  { %v3662_v6 = vmul.f32 %v3186_v7, %v859_v5 }
0x1017   :  { %v867_v8 = vrot.slane %v3662_v6, 2 }
0x1019   :  { %868 = vrot.lane.b32.xlu1 %v867_v8, %s3430_s3 }
0x108b   :  { %v869_v10 = vpop.permute.xlu1 %868 }
0x108c   :  { %2928 = vmatmul.mubr.msk.f32.vlgmr.msra.gmra.mxu1 %vm128_vm1, %v869_v10 }
0x108d   :  { %2942 = vmatpush3.msra.mxu1 %v1094_v51 }
0x108e   :  { %2943 = vmatprep.subr.mxu1 %v1093_v52 }
0x108f   :  { %2944 = vmatpush3.msra.mxu1 %v1093_v52 }
0x1090   :  { %2945 = vmatprep.subr.mxu1 %v1092_v54 }
0x1091   :  { %2946 = vmatpush3.msra.mxu1 %v1092_v54 }
0x114c   :  { %v938_v12 = vpop.f32.mrf.mxu1 }
0x114d   :  { %v943_v13 = vrot.slane %v938_v12, 4 }
0x114e   :  { %v2929_v15 = vpop.f32.mrf.mxu1 }
0x114f   :  { %v945_v16 = vadd.f32 %v943_v13, %v3564_v14 }
0x1151   :  { %3189 = vtanh.f32 %v945_v16  ;;  %v2680_v19 = vmul.f32 -1.442695, %v945_v16 }
0x1153   :  { %3191 = vpow2.f32 %v2680_v19 }
0x115e   :  { %v3190_v18 = vpop.eup %3189 }
0x115f   :  { %958 = vrot.lane.b32.xlu0 %v3190_v18, %s3429_s14 }
0x1160   :  { %v3192_v20 = vpop.eup %3191 }
0x1161   :  { %v949_v21 = vadd.f32 1.0, %v3192_v20 }
0x1163   :  { %3193 = vrcp.f32 %v949_v21 }
0x1170   :  { %v3194_v22 = vpop.eup %3193 }
0x1171   :  { %v956_v26 = vmul.f32 %v3194_v22, %v954_v25  ;;  %v1290_v25 = vld [vmem:[#allocation12 + $0x8] sm:$0xff] }
0x11d1   :  { %v959_v23 = vpop.permute.xlu0 %958 }
0x11d2   :  { %v961_v24 = vmul.f32 %v3194_v22, %v959_v23  ;;  %v1292_v23 = vld [vmem:[#allocation12 + $0x18] sm:$0xff] }
0x11d4   :  { %963 = vrot.lane.b32.xlu1 %v961_v24, %s3429_s14  ;;  %v1291_v24 = vld [vmem:[#allocation12 + $0x10] sm:$0xff] }
0x1246   :  { %v964_v27 = vpop.permute.xlu1 %963 }
0x1247   :  { %v966_v28 = vadd.f32 %v964_v27, %v956_v26  ;;  %v1289_v26 = vld [vmem:[#allocation12] sm:$0xff] }
0x1249   :  { %3195 = vtanh.f32 %v966_v28 }
0x1256   :  { %v3196_v29 = vpop.eup %3195 }
0x1257   :  { %969 = vrot.lane.b32.xlu0 %v3196_v29, %s3429_s14 }
0x12c9   :  { %v970_v30 = vpop.permute.xlu0 %969 }
0x12ca   :  { %v972_v17 = vmul.f32 %v3194_v22, %v970_v30 }
0x12cc   :  { %v978_v31 = vrot.slane %v972_v17, 4 }
0x12ce   :  { %979 = vrot.lane.b32.xlu1 %v978_v31, %s3430_s3 }
0x1340   :  { %v980_v33 = vpop.permute.xlu1 %979 }
0x1341   :  { %2939 = vmatmul.mubr.msk.f32.vlgmr.msra.gmra.mxu0 %vm128_vm1, %v980_v33 }
0x1342   :  { %2960 = vmatprep.mubr.msk.f32.mxu0 %vm3428_vm0, %v3427_v0  ;;  %2953 = vmatpush3.msra.mxu0 %v3691_v53 }
0x1343   :  { %2954 = vmatprep.subr.mxu0 %v3427_v0 }
0x1344   :  { %2955 = vmatpush3.msra.mxu0 %v3694_v55 }
0x1345   :  { %2956 = vmatprep.subr.mxu0 %v3427_v0 }
0x1346   :  { %2957 = vmatpush3.msra.mxu0 %v3697_v3 }
0x1347   :  { %2958 = vmatprep.subr.mxu0 %v3427_v0 }
0x1348   :  { %2959 = vmatpush3.msra.mxu0 %v3703_v56 }
0x1349   :  { %2961 = vmatmul.mubr.f32.vlgmr.msra.gmra.mxu0 %v3427_v0  ;;  %2974 = vmatprep.subr.mxu0 %v3427_v0 }
0x134a   :  { %2975 = vmatpush3.msra.mxu0 %v3691_v53  ;;  %2982 = vmatprep.mubr.msk.f32.mxu0 %vm3428_vm0, %v3427_v0 }
0x134b   :  { %2976 = vmatprep.subr.mxu0 %v3427_v0 }
0x134c   :  { %2977 = vmatpush3.msra.mxu0 %v3694_v55 }
0x134d   :  { %2978 = vmatprep.subr.mxu0 %v3427_v0 }
0x134e   :  { %2979 = vmatpush3.msra.mxu0 %v3697_v3 }
0x134f   :  { %2980 = vmatprep.subr.mxu0 %v3427_v0 }
0x1350   :  { %2981 = vmatpush3.msra.mxu0 %v3703_v56 }
0x1351   :  { %2996 = vmatprep.subr.mxu0 %v3427_v0 }
0x1401   :  { %v1049_v34 = vpop.f32.mrf.mxu0 }
0x1402   :  { %v1054_v35 = vrot.slane %v1049_v34, 2 }
0x1403   :  { %v2940_v36 = vpop.f32.mrf.mxu0 }
0x1404   :  { %v1056_v37 = vadd.f32 %v1054_v35, %v3564_v14  ;;  %v1065_v14 = vrot.slane %v966_v28, 6 }
0x1406   :  { %3197 = vtanh.f32 %v1056_v37  ;;  %v2682_v39 = vmul.f32 -1.442695, %v1056_v37 }
0x1408   :  { %3199 = vpow2.f32 %v2682_v39 }
0x1409   :  { %v1260_v9 = vpop.f32.mrf.mxu0 }
0x140b   :  { %v2962_v62 = vpop.f32.mrf.mxu0 }
0x1413   :  { %v3198_v38 = vpop.eup %3197 }
0x1414   :  { %1069 = vrot.lane.b32.xlu0 %v3198_v38, %s3429_s14 }
0x1415   :  { %v3200_v40 = vpop.eup %3199 }
0x1416   :  { %v1060_v41 = vadd.f32 1.0, %v3200_v40 }
0x1418   :  { %3201 = vrcp.f32 %v1060_v41 }
0x1425   :  { %v3202_v42 = vpop.eup %3201 }
0x1426   :  { %v1067_v45 = vmul.f32 %v3202_v42, %v1065_v14 }
0x1486   :  { %v1070_v43 = vpop.permute.xlu0 %1069 }
0x1487   :  { %v1072_v44 = vmul.f32 %v3202_v42, %v1070_v43 }
0x1489   :  { %1074 = vrot.lane.b32.xlu1 %v1072_v44, %s3429_s14 }
0x148d   :  { %422 = vrot.lane.b32.xlu1 %v3589_v50, %s3430_s3 }
0x1491   :  { %646 = vrot.lane.b32.xlu1 %v3627_v32, %s3430_s3 }
0x1495   :  { %974 = vrot.lane.b32.xlu1 %v972_v17, %s3430_s3 }
0x14fb   :  { %v1075_v46 = vpop.permute.xlu1 %1074 }
0x14fc   :  { %v1077_v47 = vadd.f32 %v1075_v46, %v1067_v45 }
0x14fe   :  { %3203 = vtanh.f32 %v1077_v47  ;;  %v1474_v47 = vld [vmem:[#allocation12 + $0x38] sm:$0xff] }
0x14ff   :  { %v423_v48 = vpop.permute.xlu1 %422 }
0x1500   :  { %426 = vst.msk [vmem:[#allocation2] sm:$0xc] %vm425_vm3, %v423_v48  ;;  %v1473_v48 = vld [vmem:[#allocation12 + $0x30] sm:$0xff] }
0x1503   :  { %v647_v49 = vpop.permute.xlu1 %646 }
0x1504   :  { %650 = vst.msk [vmem:[#allocation2] sm:$0xc0] %vm649_vm4, %v647_v49  ;;  %v1472_v49 = vld [vmem:[#allocation12 + $0x28] sm:$0xff] }
0x1507   :  { %v975_v50 = vpop.permute.xlu1 %974 }
0x1508   :  { %977 = vst.msk [vmem:[#allocation2 + $0x8] sm:$0x30] %vm537_vm5, %v975_v50 }
0x150b   :  { %v3204_v32 = vpop.eup %3203 }
0x150c   :  { %1080 = vrot.lane.b32.xlu0 %v3204_v32, %s3429_s14  ;;  %v1471_v32 = vld [vmem:[#allocation12 + $0x20] sm:$0xff] }
0x1510   :  { %534 = vrot.lane.b32.xlu0 %v3608_v11, %s3430_s3  ;;  %v1091_v11 = vld [vmem:[#allocation9] sm:$0xff] }
0x1511   :  { %2947 = vmatprep.subr.mxu1 %v1091_v11 }
0x1512   :  { %2948 = vmatpush3.msra.mxu1 %v1091_v11 }
0x1513   :  { %2963 = vmatprep.subr.mxu1 %v3427_v0 }
0x1514   :  { %863 = vrot.lane.b32.xlu0 %v3662_v6, %s3430_s3 }
0x157e   :  { %v1081_v57 = vpop.permute.xlu0 %1080 }
0x157f   :  { %v1083_v4 = vmul.f32 %v3202_v42, %v1081_v57  ;;  %v2686_v57 = vld [vmem:[%s3907_s8] ss:$0 sm:$0xff]  ;;  %s3431_s8 = smov [#allocation14]  }
0x1580   :  { %s2653_s20 = sshll.u32 %s3431_s8, 4  ;;  %s2654_s20 = int_to_ptr.vmem [resolvable:$true] %s2653_s20 }
0x1581   :  { %1085 = vrot.lane.b32.xlu0 %v1083_v4, %s3430_s3  ;;  %s3389_s21 = scalar_lea.vmem %s2654_s20, 32  ;;  %p3394_p3 = scmp.lt.s32.totalorder %s2654_s20, %s2654_s20 }
0x1582   :  { %v535_v58 = vpop.permute.xlu0 %534  ;;  %p3390_p2 = scmp.ne.s32.totalorder %s2654_s20, %s3389_s21  ;;  %p3395_p4 = scmp.lt.s32.totalorder %s3389_s21, %s3389_s21 }
0x1583   :  { %538 = vst.msk [vmem:[#allocation2] sm:$0x30] %vm537_vm5, %v535_v58 }
0x1584   :  { %p3396_p5 = por %p3395_p4, %p3394_p3 }
0x1586   :  { %v864_v59 = vpop.permute.xlu0 %863  ;;  %p3397_p6 = pnand %p3396_p5, %p3390_p2 }
0x1587   :  { %866 = vst.msk [vmem:[#allocation2 + $0x8] sm:$0xc] %vm425_vm3, %v864_v59 }
0x158a   :  { %v1089_v7 = vld [vmem:[#allocation2] sm:$0xff] }
0x158b   :  { %2949 = vmatprep.mubr.msk.f32.mxu1 %vm128_vm1, %v1089_v7 }
0x15f3   :  { %v1086_v60 = vpop.permute.xlu0 %1085 }
0x15f4   :  { %1088 = vst.msk [vmem:[#allocation2 + $0x8] sm:$0xc0] %vm649_vm4, %v1086_v60 }
0x15fb   :  { %v1090_v61 = vld [vmem:[#allocation2 + $0x8] sm:$0xff] }
0x15fc   :  { %2950 = vmatmul.mubr.msk.f32.vlgmr.msra.gmra.mxu1 %vm128_vm1, %v1090_v61 }
0x15fd   :  { %2971 = vmatprep.mubr.msk.f32.mxu1 %vm3428_vm0, %v3427_v0  ;;  %2964 = vmatpush3.msra.mxu1 %v1292_v23 }
0x15fe   :  { %2965 = vmatprep.subr.mxu1 %v3427_v0 }
0x15ff   :  { %2966 = vmatpush3.msra.mxu1 %v1291_v24  ;;  %v1654_v24 = vld [vmem:[#allocation12 + $0x40] sm:$0xff] }
0x1600   :  { %2967 = vmatprep.subr.mxu1 %v3427_v0 }
0x1601   :  { %2968 = vmatpush3.msra.mxu1 %v1290_v25 }
0x1602   :  { %2969 = vmatprep.subr.mxu1 %v3427_v0 }
0x1603   :  { %2970 = vmatpush3.msra.mxu1 %v1289_v26 }
0x1604   :  { %2985 = vmatprep.subr.mxu1 %v3427_v0 }
0x16bc   :  { %v2951_v1 = vpop.f32.mrf.mxu1 }
0x16bd   :  { %v3730_v2 = vadd.f32 %v2951_v1, %v2683_v63 }
0x16be   :  { %v1174_v5 = vpop.f32.mrf.mxu1 }
0x16bf   :  { %v3732_v6 = vadd.f32 %v2683_v63, %v1174_v5 }
0x16c1   :  { %v1264_v8 = vadd.f32 %v1260_v9, %v3732_v6 }
0x16c3   :  { %3205 = vtanh.f32 %v1264_v8  ;;  %v2687_v12 = vmul.f32 -1.442695, %v1264_v8 }
0x16c5   :  { %3207 = vpow2.f32 %v2687_v12 }
0x16d0   :  { %v3206_v10 = vpop.eup %3205 }
0x16d1   :  { %1274 = vrot.lane.b32.xlu1 %v3206_v10, %s3429_s14 }
0x16d2   :  { %v3208_v13 = vpop.eup %3207 }
0x16d3   :  { %v1268_v15 = vadd.f32 1.0, %v3208_v13 }
0x16d5   :  { %3209 = vrcp.f32 %v1268_v15 }
0x16e2   :  { %v3210_v16 = vpop.eup %3209 }
0x16e3   :  { %v1272_v20 = vmul.f32 0.0, %v3210_v16 }
0x1743   :  { %v1275_v18 = vpop.permute.xlu1 %1274 }
0x1744   :  { %v1277_v19 = vmul.f32 %v3210_v16, %v1275_v18 }
0x1746   :  { %1279 = vrot.lane.b32.xlu0 %v1277_v19, %s3429_s14 }
0x17b8   :  { %v1280_v21 = vpop.permute.xlu0 %1279 }
0x17b9   :  { %v1282_v22 = vadd.f32 %v1280_v21, %v1272_v20  ;;  %v1657_v20 = vld [vmem:[#allocation12 + $0x58] sm:$0xff]  ;;  %v1656_v21 = vld [vmem:[#allocation12 + $0x50] sm:$0xff] }
0x17bb   :  { %3211 = vtanh.f32 %v1282_v22  ;;  %v1451_v44 = vrot.slane %v1282_v22, 6  ;;  %v1655_v22 = vld [vmem:[#allocation12 + $0x48] sm:$0xff] }
0x17c8   :  { %v3212_v27 = vpop.eup %3211 }
0x17c9   :  { %1285 = vrot.lane.b32.xlu1 %v3212_v27, %s3429_s14 }
0x183b   :  { %v1286_v28 = vpop.permute.xlu1 %1285 }
0x183c   :  { %v1288_v29 = vmul.f32 %v3210_v16, %v1286_v28 }
0x183e   :  { %1294 = vrot.lane.b32.xlu0 %v1288_v29, %s3430_s3 }
0x18b0   :  { %v1295_v30 = vpop.permute.xlu0 %1294 }
0x18b1   :  { %2972 = vmatmul.mubr.msk.f32.vlgmr.msra.gmra.mxu1 %vm128_vm1, %v1295_v30  ;;  %2983 = vmatmul.mubr.msk.f32.vlgmr.msra.gmra.mxu0 %vm128_vm1, %v1295_v30 }
0x18b2   :  { %2997 = vmatpush3.msra.mxu0 %v3691_v53  ;;  %3004 = vmatprep.mubr.msk.f32.mxu0 %vm3428_vm0, %v3427_v0 }
0x18b3   :  { %2998 = vmatprep.subr.mxu0 %v3427_v0  ;;  %2993 = vmatprep.mubr.msk.f32.mxu1 %vm3428_vm0, %v3427_v0 }
0x18b4   :  { %2999 = vmatpush3.msra.mxu0 %v3694_v55  ;;  %2986 = vmatpush3.msra.mxu1 %v1474_v47  ;;  %v1838_v47 = vld [vmem:[#allocation12 + $0x68] sm:$0xff] }
0x18b5   :  { %3000 = vmatprep.subr.mxu0 %v3427_v0  ;;  %2987 = vmatprep.subr.mxu1 %v3427_v0 }
0x18b6   :  { %3001 = vmatpush3.msra.mxu0 %v3697_v3  ;;  %2988 = vmatpush3.msra.mxu1 %v1473_v48 }
0x18b7   :  { %3002 = vmatprep.subr.mxu0 %v3427_v0  ;;  %2989 = vmatprep.subr.mxu1 %v3427_v0 }
0x18b8   :  { %3003 = vmatpush3.msra.mxu0 %v3703_v56  ;;  %2990 = vmatpush3.msra.mxu1 %v1472_v49  ;;  %v1837_v49 = vld [vmem:[#allocation12 + $0x60] sm:$0xff] }
0x18b9   :  { %3018 = vmatprep.subr.mxu0 %v3427_v0  ;;  %2991 = vmatprep.subr.mxu1 %v3427_v0 }
0x18ba   :  { %2992 = vmatpush3.msra.mxu1 %v1471_v32 }
0x18bb   :  { %3007 = vmatprep.subr.mxu1 %v3427_v0 }
0x1971   :  { %v1364_v17 = vpop.f32.mrf.mxu1  ;;  %v1435_v31 = vpop.f32.mrf.mxu0 }
0x1972   :  { %v1440_v33 = vrot.slane %v1435_v31, 6  ;;  %v1368_v4 = vadd.f32 %v2686_v57, %v1364_v17 }
0x1973   :  { %v2973_v34 = vpop.f32.mrf.mxu1  ;;  %v2984_v35 = vpop.f32.mrf.mxu0 }
0x1974   :  { %v1442_v36 = vadd.f32 %v1440_v33, %v3732_v6 }
0x1976   :  { %3213 = vtanh.f32 %v1442_v36  ;;  %v2690_v38 = vmul.f32 -1.442695, %v1442_v36 }
0x1978   :  { %3215 = vpow2.f32 %v2690_v38 }
0x1983   :  { %v3214_v37 = vpop.eup %3213 }
0x1984   :  { %1455 = vrot.lane.b32.xlu1 %v3214_v37, %s3429_s14 }
0x1985   :  { %v3216_v39 = vpop.eup %3215 }
0x1986   :  { %v1446_v40 = vadd.f32 1.0, %v3216_v39 }
0x1988   :  { %3217 = vrcp.f32 %v1446_v40 }
0x1995   :  { %v3218_v41 = vpop.eup %3217 }
0x1996   :  { %v1453_v14 = vmul.f32 %v3218_v41, %v1451_v44 }
0x19f6   :  { %v1456_v42 = vpop.permute.xlu1 %1455 }
0x19f7   :  { %v1458_v43 = vmul.f32 %v3218_v41, %v1456_v42 }
0x19f9   :  { %1460 = vrot.lane.b32.xlu0 %v1458_v43, %s3429_s14 }
0x1a6b   :  { %v1461_v45 = vpop.permute.xlu0 %1460 }
0x1a6c   :  { %v1463_v46 = vadd.f32 %v1461_v45, %v1453_v14 }
0x1a6e   :  { %3219 = vtanh.f32 %v1463_v46  ;;  %v1634_v15 = vrot.slane %v1463_v46, 6  ;;  %v1839_v46 = vld [vmem:[#allocation12 + $0x70] sm:$0xff] }
0x1a7b   :  { %v3220_v50 = vpop.eup %3219 }
0x1a7c   :  { %1466 = vrot.lane.b32.xlu1 %v3220_v50, %s3429_s14 }
0x1aee   :  { %v1467_v51 = vpop.permute.xlu1 %1466 }
0x1aef   :  { %v1469_v52 = vmul.f32 %v3218_v41, %v1467_v51 }
0x1af1   :  { %v1476_v54 = vrot.slane %v1469_v52, 2 }
0x1af3   :  { %1477 = vrot.lane.b32.xlu0 %v1476_v54, %s3430_s3 }
0x1b65   :  { %v1478_v11 = vpop.permute.xlu0 %1477 }
0x1b66   :  { %2994 = vmatmul.mubr.msk.f32.vlgmr.msra.gmra.mxu1 %vm128_vm1, %v1478_v11  ;;  %3005 = vmatmul.mubr.msk.f32.vlgmr.msra.gmra.mxu0 %vm128_vm1, %v1478_v11 }
0x1b67   :  { %3019 = vmatpush3.msra.mxu0 %v3691_v53  ;;  %3026 = vmatprep.mubr.msk.f32.mxu0 %vm3428_vm0, %v3427_v0 }
0x1b68   :  { %3020 = vmatprep.subr.mxu0 %v3427_v0  ;;  %3015 = vmatprep.mubr.msk.f32.mxu1 %vm3428_vm0, %v3427_v0 }
0x1b69   :  { %3021 = vmatpush3.msra.mxu0 %v3694_v55  ;;  %3008 = vmatpush3.msra.mxu1 %v1657_v20 }
0x1b6a   :  { %3022 = vmatprep.subr.mxu0 %v3427_v0  ;;  %3009 = vmatprep.subr.mxu1 %v3427_v0 }
0x1b6b   :  { %3023 = vmatpush3.msra.mxu0 %v3697_v3  ;;  %3010 = vmatpush3.msra.mxu1 %v1656_v21 }
0x1b6c   :  { %3024 = vmatprep.subr.mxu0 %v3427_v0  ;;  %3011 = vmatprep.subr.mxu1 %v3427_v0 }
0x1b6d   :  { %3025 = vmatpush3.msra.mxu0 %v3703_v56  ;;  %3012 = vmatpush3.msra.mxu1 %v1655_v22 }
0x1b6e   :  { %3040 = vmatprep.subr.mxu0 %v3427_v0  ;;  %3013 = vmatprep.subr.mxu1 %v3427_v0 }
0x1b6f   :  { %3014 = vmatpush3.msra.mxu1 %v1654_v24 }
0x1b70   :  { %3029 = vmatprep.subr.mxu1 %v3427_v0 }
0x1c26   :  { %v1547_v58 = vpop.f32.mrf.mxu1  ;;  %v1618_v59 = vpop.f32.mrf.mxu0 }
0x1c27   :  { %v1551_v7 = vadd.f32 %v1547_v58, %v1368_v4  ;;  %v1623_v60 = vrot.slane %v1618_v59, 4 }
0x1c28   :  { %v2995_v61 = vpop.f32.mrf.mxu1  ;;  %v3006_v9 = vpop.f32.mrf.mxu0 }
0x1c29   :  { %v1625_v62 = vadd.f32 %v1623_v60, %v3732_v6 }
0x1c2b   :  { %3221 = vtanh.f32 %v1625_v62  ;;  %v2693_v1 = vmul.f32 -1.442695, %v1625_v62 }
0x1c2d   :  { %3223 = vpow2.f32 %v2693_v1 }
0x1c38   :  { %v3222_v63 = vpop.eup %3221 }
0x1c39   :  { %1638 = vrot.lane.b32.xlu1 %v3222_v63, %s3429_s14 }
0x1c3a   :  { %v3224_v5 = vpop.eup %3223 }
0x1c3b   :  { %v1629_v8 = vadd.f32 1.0, %v3224_v5 }
0x1c3d   :  { %3225 = vrcp.f32 %v1629_v8 }
0x1c4a   :  { %v3226_v10 = vpop.eup %3225 }
0x1c4b   :  { %v1636_v16 = vmul.f32 %v3226_v10, %v1634_v15  ;;  %v2019_v15 = vld [vmem:[#allocation12 + $0x90] sm:$0xff] }
0x1cab   :  { %v1639_v12 = vpop.permute.xlu1 %1638 }
0x1cac   :  { %v1641_v13 = vmul.f32 %v3226_v10, %v1639_v12 }
0x1cae   :  { %1643 = vrot.lane.b32.xlu0 %v1641_v13, %s3429_s14  ;;  %v2020_v13 = vld [vmem:[#allocation12 + $0x98] sm:$0xff] }
0x1d20   :  { %v1644_v18 = vpop.permute.xlu0 %1643 }
0x1d21   :  { %v1646_v19 = vadd.f32 %v1644_v18, %v1636_v16  ;;  %v2018_v16 = vld [vmem:[#allocation12 + $0x88] sm:$0xff] }
0x1d23   :  { %3227 = vtanh.f32 %v1646_v19  ;;  %v1817_v43 = vrot.slane %v1646_v19, 6  ;;  %v2017_v19 = vld [vmem:[#allocation12 + $0x80] sm:$0xff] }
0x1d30   :  { %v3228_v23 = vpop.eup %3227 }
0x1d31   :  { %1649 = vrot.lane.b32.xlu1 %v3228_v23, %s3429_s14 }
0x1da3   :  { %v1650_v25 = vpop.permute.xlu1 %1649 }
0x1da4   :  { %v1652_v26 = vmul.f32 %v3226_v10, %v1650_v25 }
0x1da6   :  { %v1659_v27 = vrot.slane %v1652_v26, 4 }
0x1da8   :  { %1660 = vrot.lane.b32.xlu0 %v1659_v27, %s3430_s3 }
0x1e1a   :  { %v1661_v28 = vpop.permute.xlu0 %1660 }
0x1e1b   :  { %3016 = vmatmul.mubr.msk.f32.vlgmr.msra.gmra.mxu1 %vm128_vm1, %v1661_v28  ;;  %3027 = vmatmul.mubr.msk.f32.vlgmr.msra.gmra.mxu0 %vm128_vm1, %v1661_v28 }
0x1e1c   :  { %3041 = vmatpush3.msra.mxu0 %v3691_v53  ;;  %3048 = vmatprep.mubr.msk.f32.mxu0 %vm3428_vm0, %v3427_v0 }
0x1e1d   :  { %3042 = vmatprep.subr.mxu0 %v3427_v0  ;;  %3037 = vmatprep.mubr.msk.f32.mxu1 %vm3428_vm0, %v3427_v0 }
0x1e1e   :  { %3043 = vmatpush3.msra.mxu0 %v3694_v55 }
0x1e1f   :  { %3044 = vmatprep.subr.mxu0 %v3427_v0 }
0x1e20   :  { %3045 = vmatpush3.msra.mxu0 %v3697_v3 }
0x1e21   :  { %3046 = vmatprep.subr.mxu0 %v3427_v0 }
0x1e22   :  { %3047 = vmatpush3.msra.mxu0 %v3703_v56 }
0x1e23   :  { %3062 = vmatprep.subr.mxu0 %v3427_v0 }
0x1edb   :  { %v1730_v29 = vpop.f32.mrf.mxu1  ;;  %v1801_v30 = vpop.f32.mrf.mxu0 }
0x1edc   :  { %v1734_v17 = vadd.f32 %v1730_v29, %v1551_v7  ;;  %v1806_v31 = vrot.slane %v1801_v30, 2 }
0x1edd   :  { %v3017_v33 = vpop.f32.mrf.mxu1  ;;  %v3028_v34 = vpop.f32.mrf.mxu0 }
0x1ede   :  { %v1808_v35 = vadd.f32 %v1806_v31, %v3732_v6  ;;  %v1840_v6 = vld [vmem:[#allocation12 + $0x78] sm:$0xff] }
0x1edf   :  { %3030 = vmatpush3.msra.mxu1 %v1840_v6 }
0x1ee0   :  { %3229 = vtanh.f32 %v1808_v35  ;;  %v2696_v37 = vmul.f32 -1.442695, %v1808_v35  ;;  %3031 = vmatprep.subr.mxu1 %v3427_v0 }
0x1ee1   :  { %3032 = vmatpush3.msra.mxu1 %v1839_v46 }
0x1ee2   :  { %3231 = vpow2.f32 %v2696_v37  ;;  %3033 = vmatprep.subr.mxu1 %v3427_v0 }
0x1ee3   :  { %3034 = vmatpush3.msra.mxu1 %v1838_v47 }
0x1ee4   :  { %3035 = vmatprep.subr.mxu1 %v3427_v0 }
0x1ee5   :  { %3036 = vmatpush3.msra.mxu1 %v1837_v49 }
0x1ee6   :  { %3051 = vmatprep.subr.mxu1 %v3427_v0 }
0x1eed   :  { %v3230_v36 = vpop.eup %3229 }
0x1eee   :  { %1821 = vrot.lane.b32.xlu1 %v3230_v36, %s3429_s14 }
0x1eef   :  { %v3232_v38 = vpop.eup %3231 }
0x1ef0   :  { %v1812_v39 = vadd.f32 1.0, %v3232_v38 }
0x1ef2   :  { %3233 = vrcp.f32 %v1812_v39 }
0x1eff   :  { %v3234_v40 = vpop.eup %3233 }
0x1f00   :  { %v1819_v44 = vmul.f32 %v3234_v40, %v1817_v43  ;;  %v2200_v43 = vld [vmem:[#allocation12 + $0xa8] sm:$0xff] }
0x1f60   :  { %v1822_v41 = vpop.permute.xlu1 %1821 }
0x1f61   :  { %v1824_v42 = vmul.f32 %v3234_v40, %v1822_v41  ;;  %v2202_v41 = vld [vmem:[#allocation12 + $0xb8] sm:$0xff] }
0x1f63   :  { %1826 = vrot.lane.b32.xlu0 %v1824_v42, %s3429_s14  ;;  %v2201_v42 = vld [vmem:[#allocation12 + $0xb0] sm:$0xff] }
0x1fd5   :  { %v1827_v14 = vpop.permute.xlu0 %1826 }
0x1fd6   :  { %v1829_v45 = vadd.f32 %v1827_v14, %v1819_v44  ;;  %v2199_v14 = vld [vmem:[#allocation12 + $0xa0] sm:$0xff] }
0x1fd8   :  { %3235 = vtanh.f32 %v1829_v45  ;;  %v1997_v5 = vrot.slane %v1829_v45, 6 }
0x1fe5   :  { %v3236_v48 = vpop.eup %3235 }
0x1fe6   :  { %1832 = vrot.lane.b32.xlu1 %v3236_v48, %s3429_s14 }
0x2058   :  { %v1833_v50 = vpop.permute.xlu1 %1832 }
0x2059   :  { %v1835_v32 = vmul.f32 %v3234_v40, %v1833_v50 }
0x205b   :  { %v1842_v51 = vrot.slane %v1835_v32, 6 }
0x205d   :  { %1843 = vrot.lane.b32.xlu0 %v1842_v51, %s3430_s3 }
0x20cf   :  { %v1844_v52 = vpop.permute.xlu0 %1843 }
0x20d0   :  { %3038 = vmatmul.mubr.msk.f32.vlgmr.msra.gmra.mxu1 %vm128_vm1, %v1844_v52  ;;  %3049 = vmatmul.mubr.msk.f32.vlgmr.msra.gmra.mxu0 %vm128_vm1, %v1844_v52 }
0x20d1   :  { %3063 = vmatpush3.msra.mxu0 %v3691_v53  ;;  %3070 = vmatprep.mubr.msk.f32.mxu0 %vm3428_vm0, %v3427_v0 }
0x20d2   :  { %3064 = vmatprep.subr.mxu0 %v3427_v0  ;;  %3059 = vmatprep.mubr.msk.f32.mxu1 %vm3428_vm0, %v3427_v0 }
0x20d3   :  { %3065 = vmatpush3.msra.mxu0 %v3694_v55  ;;  %3052 = vmatpush3.msra.mxu1 %v2020_v13 }
0x20d4   :  { %3066 = vmatprep.subr.mxu0 %v3427_v0  ;;  %3053 = vmatprep.subr.mxu1 %v3427_v0 }
0x20d5   :  { %3067 = vmatpush3.msra.mxu0 %v3697_v3  ;;  %3054 = vmatpush3.msra.mxu1 %v2019_v15 }
0x20d6   :  { %3068 = vmatprep.subr.mxu0 %v3427_v0  ;;  %3055 = vmatprep.subr.mxu1 %v3427_v0 }
0x20d7   :  { %3069 = vmatpush3.msra.mxu0 %v3703_v56  ;;  %3056 = vmatpush3.msra.mxu1 %v2018_v16 }
0x20d8   :  { %3084 = vmatprep.subr.mxu0 %v3427_v0  ;;  %3057 = vmatprep.subr.mxu1 %v3427_v0 }
0x20d9   :  { %3058 = vmatpush3.msra.mxu1 %v2017_v19 }
0x20da   :  { %3073 = vmatprep.subr.mxu1 %v3427_v0 }
0x2190   :  { %v1913_v54 = vpop.f32.mrf.mxu1  ;;  %v1984_v11 = vpop.f32.mrf.mxu0 }
0x2191   :  { %v1917_v57 = vadd.f32 %v1913_v54, %v1734_v17  ;;  %v1988_v4 = vadd.f32 %v1984_v11, %v3730_v2 }
0x2192   :  { %v3039_v58 = vpop.f32.mrf.mxu1  ;;  %v3050_v59 = vpop.f32.mrf.mxu0 }
0x2193   :  { %3237 = vtanh.f32 %v1988_v4  ;;  %v2699_v60 = vmul.f32 -1.442695, %v1988_v4 }
0x2195   :  { %3239 = vpow2.f32 %v2699_v60 }
0x21a0   :  { %v3238_v7 = vpop.eup %3237 }
0x21a1   :  { %2001 = vrot.lane.b32.xlu1 %v3238_v7, %s3429_s14 }
0x21a2   :  { %v3240_v61 = vpop.eup %3239 }
0x21a3   :  { %v1992_v9 = vadd.f32 1.0, %v3240_v61  ;;  %v2385_v61 = vld [vmem:[#allocation12 + $0xd8] sm:$0xff] }
0x21a5   :  { %3241 = vrcp.f32 %v1992_v9  ;;  %v2384_v9 = vld [vmem:[#allocation12 + $0xd0] sm:$0xff] }
0x21b2   :  { %v3242_v62 = vpop.eup %3241 }
0x21b3   :  { %v1999_v8 = vmul.f32 %v3242_v62, %v1997_v5 }
0x2213   :  { %v2002_v63 = vpop.permute.xlu1 %2001 }
0x2214   :  { %v2004_v1 = vmul.f32 %v3242_v62, %v2002_v63 }
0x2216   :  { %2006 = vrot.lane.b32.xlu0 %v2004_v1, %s3429_s14  ;;  %v2382_v1 = vld [vmem:[#allocation12 + $0xc0] sm:$0xff] }
0x2288   :  { %v2007_v10 = vpop.permute.xlu0 %2006 }
0x2289   :  { %v2009_v12 = vadd.f32 %v2007_v10, %v1999_v8 }
0x228b   :  { %3243 = vtanh.f32 %v2009_v12  ;;  %v2179_v37 = vrot.slane %v2009_v12, 6 }
0x2298   :  { %v3244_v18 = vpop.eup %3243 }
0x2299   :  { %2012 = vrot.lane.b32.xlu1 %v3244_v18, %s3429_s14 }
0x230b   :  { %v2013_v20 = vpop.permute.xlu1 %2012 }
0x230c   :  { %v2015_v21 = vmul.f32 %v3242_v62, %v2013_v20  ;;  %v2383_v62 = vld [vmem:[#allocation12 + $0xc8] sm:$0xff] }
0x230e   :  { %2022 = vrot.lane.b32.xlu0 %v2015_v21, %s3430_s3 }
0x2380   :  { %v2023_v22 = vpop.permute.xlu0 %2022 }
0x2381   :  { %3060 = vmatmul.mubr.msk.f32.vlgmr.msra.gmra.mxu1 %vm128_vm1, %v2023_v22  ;;  %3071 = vmatmul.mubr.msk.f32.vlgmr.msra.gmra.mxu0 %vm128_vm1, %v2023_v22 }
0x2382   :  { %3085 = vmatpush3.msra.mxu0 %v3691_v53  ;;  %3092 = vmatprep.mubr.msk.f32.mxu0 %vm3428_vm0, %v3427_v0 }
0x2383   :  { %3086 = vmatprep.subr.mxu0 %v3427_v0  ;;  %3081 = vmatprep.mubr.msk.f32.mxu1 %vm3428_vm0, %v3427_v0 }
0x2384   :  { %3087 = vmatpush3.msra.mxu0 %v3694_v55  ;;  %3074 = vmatpush3.msra.mxu1 %v2202_v41 }
0x2385   :  { %3088 = vmatprep.subr.mxu0 %v3427_v0  ;;  %3075 = vmatprep.subr.mxu1 %v3427_v0 }
0x2386   :  { %3089 = vmatpush3.msra.mxu0 %v3697_v3  ;;  %3076 = vmatpush3.msra.mxu1 %v2201_v42 }
0x2387   :  { %3090 = vmatprep.subr.mxu0 %v3427_v0  ;;  %3077 = vmatprep.subr.mxu1 %v3427_v0 }
0x2388   :  { %3091 = vmatpush3.msra.mxu0 %v3703_v56  ;;  %3078 = vmatpush3.msra.mxu1 %v2200_v43 }
0x2389   :  { %3106 = vmatprep.subr.mxu0 %v3427_v0  ;;  %3079 = vmatprep.subr.mxu1 %v3427_v0 }
0x238a   :  { %3080 = vmatpush3.msra.mxu1 %v2199_v14 }
0x238b   :  { %3095 = vmatprep.subr.mxu1 %v3427_v0 }
0x2441   :  { %v2092_v23 = vpop.f32.mrf.mxu1  ;;  %v2163_v24 = vpop.f32.mrf.mxu0 }
0x2442   :  { %v2096_v25 = vadd.f32 %v2092_v23, %v1917_v57  ;;  %v2168_v26 = vrot.slane %v2163_v24, 6 }
0x2443   :  { %v3061_v27 = vpop.f32.mrf.mxu1  ;;  %v3072_v28 = vpop.f32.mrf.mxu0 }
0x2444   :  { %v2170_v29 = vadd.f32 %v2168_v26, %v3730_v2 }
0x2446   :  { %3245 = vtanh.f32 %v2170_v29  ;;  %v2702_v17 = vmul.f32 -1.442695, %v2170_v29 }
0x2448   :  { %3247 = vpow2.f32 %v2702_v17 }
0x2453   :  { %v3246_v30 = vpop.eup %3245 }
0x2454   :  { %2183 = vrot.lane.b32.xlu1 %v3246_v30, %s3429_s14 }
0x2455   :  { %v3248_v31 = vpop.eup %3247 }
0x2456   :  { %v2174_v33 = vadd.f32 1.0, %v3248_v31 }
0x2458   :  { %3249 = vrcp.f32 %v2174_v33  ;;  %v2567_v33 = vld [vmem:[#allocation12 + $0xf0] sm:$0xff] }
0x2465   :  { %v3250_v34 = vpop.eup %3249 }
0x2466   :  { %v2181_v38 = vmul.f32 %v3250_v34, %v2179_v37 }
0x24c6   :  { %v2184_v35 = vpop.permute.xlu1 %2183 }
0x24c7   :  { %v2186_v36 = vmul.f32 %v3250_v34, %v2184_v35 }
0x24c9   :  { %2188 = vrot.lane.b32.xlu0 %v2186_v36, %s3429_s14  ;;  %v2565_v36 = vld [vmem:[#allocation12 + $0xe0] sm:$0xff] }
0x253b   :  { %v2189_v39 = vpop.permute.xlu0 %2188 }
0x253c   :  { %v2191_v40 = vadd.f32 %v2189_v39, %v2181_v38 }
0x253e   :  { %3251 = vtanh.f32 %v2191_v40  ;;  %v2362_v58 = vrot.slane %v2191_v40, 6 }
0x254b   :  { %v3252_v44 = vpop.eup %3251 }
0x254c   :  { %2194 = vrot.lane.b32.xlu1 %v3252_v44, %s3429_s14 }
0x25be   :  { %v2195_v45 = vpop.permute.xlu1 %2194 }
0x25bf   :  { %v2197_v6 = vmul.f32 %v3250_v34, %v2195_v45  ;;  %v2566_v34 = vld [vmem:[#allocation12 + $0xe8] sm:$0xff] }
0x25c1   :  { %v2204_v46 = vrot.slane %v2197_v6, 2 }
0x25c3   :  { %2205 = vrot.lane.b32.xlu0 %v2204_v46, %s3430_s3 }
0x2635   :  { %v2206_v47 = vpop.permute.xlu0 %2205 }
0x2636   :  { %3082 = vmatmul.mubr.msk.f32.vlgmr.msra.gmra.mxu1 %vm128_vm1, %v2206_v47  ;;  %3093 = vmatmul.mubr.msk.f32.vlgmr.msra.gmra.mxu0 %vm128_vm1, %v2206_v47 }
0x2637   :  { %3107 = vmatpush3.msra.mxu0 %v3691_v53  ;;  %3114 = vmatprep.mubr.msk.f32.mxu0 %vm3428_vm0, %v3427_v0 }
0x2638   :  { %3108 = vmatprep.subr.mxu0 %v3427_v0  ;;  %3103 = vmatprep.mubr.msk.f32.mxu1 %vm3428_vm0, %v3427_v0 }
0x2639   :  { %3109 = vmatpush3.msra.mxu0 %v3694_v55  ;;  %3096 = vmatpush3.msra.mxu1 %v2385_v61 }
0x263a   :  { %3110 = vmatprep.subr.mxu0 %v3427_v0  ;;  %3097 = vmatprep.subr.mxu1 %v3427_v0 }
0x263b   :  { %3111 = vmatpush3.msra.mxu0 %v3697_v3  ;;  %3098 = vmatpush3.msra.mxu1 %v2384_v9 }
0x263c   :  { %3112 = vmatprep.subr.mxu0 %v3427_v0  ;;  %3099 = vmatprep.subr.mxu1 %v3427_v0 }
0x263d   :  { %3113 = vmatpush3.msra.mxu0 %v3703_v56  ;;  %3100 = vmatpush3.msra.mxu1 %v2383_v62 }
0x263e   :  { %3101 = vmatprep.subr.mxu1 %v3427_v0 }
0x263f   :  { %3102 = vmatpush3.msra.mxu1 %v2382_v1 }
0x2640   :  { %3117 = vmatprep.subr.mxu1 %v3427_v0 }
0x26f6   :  { %v2275_v48 = vpop.f32.mrf.mxu1  ;;  %v2346_v53 = vpop.f32.mrf.mxu0 }
0x26f7   :  { %v2279_v49 = vadd.f32 %v2275_v48, %v2096_v25  ;;  %v2351_v50 = vrot.slane %v2346_v53, 4 }
0x26f8   :  { %v3083_v32 = vpop.f32.mrf.mxu1  ;;  %v3094_v51 = vpop.f32.mrf.mxu0 }
0x26f9   :  { %v2353_v52 = vadd.f32 %v2351_v50, %v3730_v2 }
0x26fb   :  { %3253 = vtanh.f32 %v2353_v52  ;;  %v2705_v55 = vmul.f32 -1.442695, %v2353_v52 }
0x26fd   :  { %3255 = vpow2.f32 %v2705_v55 }
0x2708   :  { %v3254_v54 = vpop.eup %3253 }
0x2709   :  { %2366 = vrot.lane.b32.xlu1 %v3254_v54, %s3429_s14 }
0x270a   :  { %v3256_v11 = vpop.eup %3255 }
0x270b   :  { %v2357_v3 = vadd.f32 1.0, %v3256_v11 }
0x270d   :  { %3257 = vrcp.f32 %v2357_v3 }
0x271a   :  { %v3258_v57 = vpop.eup %3257 }
0x271b   :  { %v2364_v59 = vmul.f32 %v3258_v57, %v2362_v58 }
0x277b   :  { %v2367_v4 = vpop.permute.xlu1 %2366 }
0x277c   :  { %v2369_v56 = vmul.f32 %v3258_v57, %v2367_v4 }
0x277e   :  { %2371 = vrot.lane.b32.xlu0 %v2369_v56, %s3429_s14 }
0x27f0   :  { %v2372_v7 = vpop.permute.xlu0 %2371 }
0x27f1   :  { %v2374_v60 = vadd.f32 %v2372_v7, %v2364_v59 }
0x27f3   :  { %3259 = vtanh.f32 %v2374_v60  ;;  %v2545_v29 = vrot.slane %v2374_v60, 6 }
0x2800   :  { %v3260_v63 = vpop.eup %3259 }
0x2801   :  { %2377 = vrot.lane.b32.xlu1 %v3260_v63, %s3429_s14 }
0x2873   :  { %v2378_v5 = vpop.permute.xlu1 %2377 }
0x2874   :  { %v2380_v8 = vmul.f32 %v3258_v57, %v2378_v5 }
0x2876   :  { %v2387_v10 = vrot.slane %v2380_v8, 4 }
0x2878   :  { %2388 = vrot.lane.b32.xlu0 %v2387_v10, %s3430_s3 }
0x28ea   :  { %v2389_v12 = vpop.permute.xlu0 %2388 }
0x28eb   :  { %3104 = vmatmul.mubr.msk.f32.vlgmr.msra.gmra.mxu1 %vm128_vm1, %v2389_v12  ;;  %3115 = vmatmul.mubr.msk.f32.vlgmr.msra.gmra.mxu0 %vm128_vm1, %v2389_v12 }
0x28ec   :  { %3125 = vmatprep.mubr.msk.f32.mxu1 %vm3428_vm0, %v3427_v0 }
0x29ab   :  { %v2458_v13 = vpop.f32.mrf.mxu1  ;;  %v2529_v15 = vpop.f32.mrf.mxu0 }
0x29ac   :  { %v2462_v16 = vadd.f32 %v2458_v13, %v2279_v49  ;;  %v2534_v18 = vrot.slane %v2529_v15, 2 }
0x29ad   :  { %v3105_v19 = vpop.f32.mrf.mxu1  ;;  %v3116_v20 = vpop.f32.mrf.mxu0 }
0x29ae   :  { %v2536_v21 = vadd.f32 %v2534_v18, %v3730_v2  ;;  %v2568_v2 = vld [vmem:[#allocation12 + $0xf8] sm:$0xff] }
0x29af   :  { %3118 = vmatpush3.msra.mxu1 %v2568_v2 }
0x29b0   :  { %3261 = vtanh.f32 %v2536_v21  ;;  %v2708_v23 = vmul.f32 -1.442695, %v2536_v21  ;;  %3119 = vmatprep.subr.mxu1 %v3427_v0 }
0x29b1   :  { %3120 = vmatpush3.msra.mxu1 %v2567_v33 }
0x29b2   :  { %3263 = vpow2.f32 %v2708_v23  ;;  %3121 = vmatprep.subr.mxu1 %v3427_v0 }
0x29b3   :  { %3122 = vmatpush3.msra.mxu1 %v2566_v34 }
0x29b4   :  { %3123 = vmatprep.subr.mxu1 %v3427_v0 }
0x29b5   :  { %3124 = vmatpush3.msra.mxu1 %v2565_v36 }
0x29bd   :  { %v3262_v22 = vpop.eup %3261 }
0x29be   :  { %2549 = vrot.lane.b32.xlu1 %v3262_v22, %s3429_s14 }
0x29bf   :  { %v3264_v24 = vpop.eup %3263 }
0x29c0   :  { %v2540_v25 = vadd.f32 1.0, %v3264_v24 }
0x29c2   :  { %3265 = vrcp.f32 %v2540_v25 }
0x29cf   :  { %v3266_v26 = vpop.eup %3265 }
0x29d0   :  { %v2547_v30 = vmul.f32 %v3266_v26, %v2545_v29 }
0x2a30   :  { %v2550_v27 = vpop.permute.xlu1 %2549 }
0x2a31   :  { %v2552_v28 = vmul.f32 %v3266_v26, %v2550_v27 }
0x2a33   :  { %2554 = vrot.lane.b32.xlu0 %v2552_v28, %s3429_s14 }
0x2aa5   :  { %v2555_v17 = vpop.permute.xlu0 %2554 }
0x2aa6   :  { %v2557_v31 = vadd.f32 %v2555_v17, %v2547_v30 }
0x2aa8   :  { %3267 = vtanh.f32 %v2557_v31 }
0x2ab5   :  { %v3268_v35 = vpop.eup %3267 }
0x2ab6   :  { %2560 = vrot.lane.b32.xlu1 %v3268_v35, %s3429_s14 }
0x2b28   :  { %v2561_v37 = vpop.permute.xlu1 %2560 }
0x2b29   :  { %v2563_v38 = vmul.f32 %v3266_v26, %v2561_v37 }
0x2b2b   :  { %v2570_v39 = vrot.slane %v2563_v38, 6 }
0x2b2d   :  { %2571 = vrot.lane.b32.xlu0 %v2570_v39, %s3430_s3 }
0x2b9f   :  { %v2572_v40 = vpop.permute.xlu0 %2571 }
0x2ba0   :  { %3126 = vmatmul.mubr.msk.f32.vlgmr.msra.gmra.mxu1 %vm128_vm1, %v2572_v40 }
0x2c60   :  { %v2641_v41 = vpop.f32.mrf.mxu1 }
0x2c61   :  { %v2645_v42 = vadd.f32 %v2641_v41, %v2462_v16 }
0x2c62   :  { %v3127_v43 = vpop.f32.mrf.mxu1 }
0x2c63   :  { %2646 = vst [vmem:[#allocation14] sm:$0x3] %v2645_v42 }
0x2c64   :  { %3400 = shalt.err (!%p3397_p6)
}
0x2c65   :  { %2656 = dma.vmem_to_hbm [thread:$0]  %s2654_s20, 32, %s3908_s9, [#allocation5]  }
0x2c66   :  { %3417 = dma.done.wait [#allocation5], 32  }
0x2c67   :  { %3418 = vsyncadd [#allocation5], 4294967264 }
0x2c68   :  { %2660 = vsyncpa [#allocation4], 1 }
0x2c69   :  { %2661 = vsyncpa [#allocation7], 1 }
0x2c6a   :  { %2662 = vsyncpa [#allocation10], 1 }
0x2c6b   :  { %2663 = vsyncpa [#allocation13], 1 }
0x2c6c   :  { %2664 = vsyncpa [#allocation5], 1 }

</bundles_post_ra>
